<compile_context>
chip_gen: v6e
topology: v6e:2x2x1
jax: 0.10.0
libtpu: 0.0.40
codegen_flags: <defaults>
</compile_context>

<pallas_src>
import math

import jax
import jax.numpy as jnp
from jax import lax
from jax.experimental import pallas as pl
from jax.experimental.pallas import tpu as pltpu

# ----------------------------- synthetic model config ----------------------------
VOCAB = 50
SEQ = 8                    # sublane-aligned (multiple of 8)
HIDDEN = 32                # real hidden size
FFN = 64                   # real FFN size
NUM_LAYERS = 2
NUM_CLASSES = 5
LAYERS_ARG = "-1"          # ModelWrapper(..., layers='-1')
INITIAL_CLS_TOKEN = True   # CLS token at position 0
LN_EPS = 1e-5

# lane-padded sizes (TPU lane width = 128)
D_PAD = 128
FFN_PAD = 128
CLS_PAD = 128
VOCAB_PAD = 128
NUM_VEC_ROWS = 16          # per-layer bias/LN slab rows (11 used, padded to 16 sublanes)

# column offsets of the 128-wide sub-blocks inside the per-layer weight slab [128, 7*128]
# [ Wq | Wk | Wv | Wo | W1 | W2 | DecW ]   (DecW only populated for the last layer)
WQ_OFF, WK_OFF, WV_OFF, WO_OFF, W1_OFF, W2_OFF, DEC_OFF = (i * D_PAD for i in range(7))
W_SLAB_COLS = 7 * D_PAD

# rows inside the per-layer vector slab [16, 128]
BQ, BK, BV, BO, LN1G, LN1B, B1, B2, LN2G, LN2B, DEC_B = range(11)


# ----------------------------- fused embedding+encoder+decoder kernel --------------
def fused_forward_kernel(ids_ref, tok_ref, pos_ref, w_ref, v_ref, o_ref):
    # ---- embedding: one-hot gather on the MXU (ids live in SMEM via scalar prefetch) ----
    row_id = lax.broadcasted_iota(jnp.int32, (SEQ, VOCAB_PAD), 0)
    col_id = lax.broadcasted_iota(jnp.int32, (SEQ, VOCAB_PAD), 1)
    ids2d = jnp.zeros((SEQ, VOCAB_PAD), jnp.int32)
    for s in range(SEQ):                                   # SEQ=8, unrolled at trace time
        ids2d = jnp.where(row_id == s, ids_ref[s], ids2d)
    onehot = (col_id == ids2d).astype(jnp.float32)         # (SEQ, VOCAB_PAD), exact 0/1
    # exact f32 gather-as-matmul + positional add; padded lanes of tok/pos are zero
    x = jnp.dot(onehot, tok_ref[...], preferred_element_type=jnp.float32) + pos_ref[...]

    # ---- constants hoisted out of the layer loop ----
    lane = lax.broadcasted_iota(jnp.int32, (1, D_PAD), 1)
    mask = (lane < HIDDEN).astype(jnp.float32)
    inv_h = 1.0 / HIDDEN
    scale = 1.0 / math.sqrt(HIDDEN)
    gelu_c = math.sqrt(2.0 / math.pi)

    def layernorm(y, g, b):
        # statistics over the real HIDDEN lanes only (padded lanes are zero)
        mu = jnp.sum(y, axis=-1, keepdims=True) * inv_h
        d = (y - mu) * mask
        var = jnp.sum(d * d, axis=-1, keepdims=True) * inv_h
        return d * lax.rsqrt(var + LN_EPS) * g + b

    # ---- encoder layers, unrolled in-kernel (no grid steps, state stays resident) ----
    for l in range(NUM_LAYERS):
        vl = v_ref[l]                                      # (16, D_PAD) f32 bias/LN slab
        xb = x.astype(jnp.bfloat16)

        # fused Q/K/V projection: one (SEQ,128)@(128,384) MXU issue
        qkv = jnp.dot(xb, w_ref[l, :, WQ_OFF:WV_OFF + D_PAD],
                      preferred_element_type=jnp.float32)  # (SEQ, 3*D_PAD)
        q = qkv[:, 0:D_PAD] + vl[BQ:BQ + 1, :]
        k = qkv[:, D_PAD:2 * D_PAD] + vl[BK:BK + 1, :]
        v = qkv[:, 2 * D_PAD:3 * D_PAD] + vl[BV:BV + 1, :]

        # single-head self-attention (q @ k^T via dot_general, no explicit transpose)
        s = lax.dot_general(q.astype(jnp.bfloat16), k.astype(jnp.bfloat16),
                            dimension_numbers=(((1,), (1,)), ((), ())),
                            preferred_element_type=jnp.float32) * scale   # (SEQ, SEQ)
        s = s - jnp.max(s, axis=-1, keepdims=True)
        p = jnp.exp(s)
        p = p / jnp.sum(p, axis=-1, keepdims=True)         # exact softmax normalization

        attn = jnp.dot(p.astype(jnp.bfloat16), v.astype(jnp.bfloat16),
                       preferred_element_type=jnp.float32)                # (SEQ, D_PAD)
        attn = jnp.dot(attn.astype(jnp.bfloat16), w_ref[l, :, WO_OFF:WO_OFF + D_PAD],
                       preferred_element_type=jnp.float32) + vl[BO:BO + 1, :]

        h = layernorm(x + attn, vl[LN1G:LN1G + 1, :], vl[LN1B:LN1B + 1, :])

        # feed-forward
        f = jnp.dot(h.astype(jnp.bfloat16), w_ref[l, :, W1_OFF:W1_OFF + FFN_PAD],
                    preferred_element_type=jnp.float32) + vl[B1:B1 + 1, :]
        # TODO(synk): tanh-approx GELU; exact erf form (PyTorch nn.GELU default) differs ~1e-3.
        f = 0.5 * f * (1.0 + jnp.tanh(gelu_c * (f + 0.044715 * f * f * f)))
        f = jnp.dot(f.astype(jnp.bfloat16), w_ref[l, :, W2_OFF:W2_OFF + D_PAD],
                    preferred_element_type=jnp.float32) + vl[B2:B2 + 1, :]

        x = layernorm(h + f, vl[LN2G:LN2G + 1, :], vl[LN2B:LN2B + 1, :])

    # ---- decoder (weights folded into the last layer's slabs) ----
    scores = jnp.dot(x.astype(jnp.bfloat16),
                     w_ref[NUM_LAYERS - 1, :, DEC_OFF:DEC_OFF + CLS_PAD],
                     preferred_element_type=jnp.float32)
    scores = scores + v_ref[NUM_LAYERS - 1, DEC_B:DEC_B + 1, :]
    o_ref[...] = scores                                    # (SEQ, CLS_PAD); row 0 = CLS scores


def fused_forward(ids, tok_emb_p, pos_emb_p, w_slab, v_slab):
    flops = 2 * SEQ * VOCAB_PAD * D_PAD                                   # embedding one-hot matmul
    flops += NUM_LAYERS * (2 * SEQ * D_PAD * 3 * D_PAD                    # fused QKV
                           + 2 * SEQ * SEQ * D_PAD * 2                    # scores + p@v
                           + 2 * SEQ * D_PAD * D_PAD                      # Wo
                           + 2 * SEQ * D_PAD * FFN_PAD                    # W1
                           + 2 * SEQ * FFN_PAD * D_PAD)                   # W2
    flops += 2 * SEQ * D_PAD * CLS_PAD                                    # decoder
    transcendentals = NUM_LAYERS * (SEQ * SEQ + SEQ * FFN_PAD)
    bytes_accessed = (ids.size * 4 + tok_emb_p.size * 4 + pos_emb_p.size * 4
                      + w_slab.size * 2 + v_slab.size * 4 + SEQ * CLS_PAD * 4)

    return pl.pallas_call(
        fused_forward_kernel,
        out_shape=jax.ShapeDtypeStruct((SEQ, CLS_PAD), jnp.float32),
        grid_spec=pltpu.PrefetchScalarGridSpec(
            num_scalar_prefetch=1,                         # ids -> SMEM before the grid runs
            grid=(1,),
            in_specs=[
                pl.BlockSpec((VOCAB_PAD, D_PAD), lambda i, ids: (0, 0)),                  # token emb
                pl.BlockSpec((SEQ, D_PAD), lambda i, ids: (0, 0)),                        # pos emb
                pl.BlockSpec((NUM_LAYERS, D_PAD, W_SLAB_COLS), lambda i, ids: (0, 0, 0)),  # weight slab
                pl.BlockSpec((NUM_LAYERS, NUM_VEC_ROWS, D_PAD), lambda i, ids: (0, 0, 0)),  # bias/LN slab
            ],
            out_specs=pl.BlockSpec((SEQ, CLS_PAD), lambda i, ids: (0, 0)),
        ),
        compiler_params=pltpu.CompilerParams(
            dimension_semantics=("arbitrary",),
        ),
        cost_estimate=pl.CostEstimate(flops=flops,
                                      transcendentals=transcendentals,
                                      bytes_accessed=bytes_accessed),
    )(ids, tok_emb_p, pos_emb_p, w_slab, v_slab)


# ----------------------------- parameter construction -----------------------------
def init_params(key):
    def normal(k, shape, scale=0.02):
        return (scale * jax.random.normal(k, shape)).astype(jnp.float32)

    def pad2(m, rows, cols):
        return jnp.pad(m, ((0, rows - m.shape[0]), (0, cols - m.shape[1])))

    def padv(v, n=D_PAD):
        return jnp.pad(v, (0, n - v.shape[0]))

    keys = jax.random.split(key, 4 + NUM_LAYERS)
    tok_emb = normal(keys[0], (VOCAB, HIDDEN))
    pos_emb = normal(keys[1], (SEQ, HIDDEN))
    dec_w = normal(keys[2], (HIDDEN, NUM_CLASSES))
    dec_b = jnp.zeros((NUM_CLASSES,), jnp.float32)

    w_layers, v_layers = [], []
    for li in range(NUM_LAYERS):
        lk = jax.random.split(keys[4 + li], 8)
        wq = normal(lk[0], (HIDDEN, HIDDEN))
        wk = normal(lk[1], (HIDDEN, HIDDEN))
        wv = normal(lk[2], (HIDDEN, HIDDEN))
        wo = normal(lk[3], (HIDDEN, HIDDEN))
        w1 = normal(lk[4], (HIDDEN, FFN))
        w2 = normal(lk[5], (FFN, HIDDEN))

        # decoder W lives in the LAST layer's slab only (zeros elsewhere)
        dec_block = dec_w if li == NUM_LAYERS - 1 else jnp.zeros((HIDDEN, NUM_CLASSES), jnp.float32)

        # [Wq | Wk | Wv | Wo | W1 | W2 | DecW], each zero-padded to 128x128
        w_slab_l = jnp.concatenate(
            [pad2(wq, D_PAD, D_PAD), pad2(wk, D_PAD, D_PAD), pad2(wv, D_PAD, D_PAD),
             pad2(wo, D_PAD, D_PAD), pad2(w1, D_PAD, FFN_PAD), pad2(w2, FFN_PAD, D_PAD),
             pad2(dec_block, D_PAD, CLS_PAD)],
            axis=1)                                                    # (128, 896)

        dec_b_row = dec_b if li == NUM_LAYERS - 1 else jnp.zeros((NUM_CLASSES,), jnp.float32)
        rows = [
            padv(jnp.zeros((HIDDEN,), jnp.float32)),   # bq
            padv(jnp.zeros((HIDDEN,), jnp.float32)),   # bk
            padv(jnp.zeros((HIDDEN,), jnp.float32)),   # bv
            padv(jnp.zeros((HIDDEN,), jnp.float32)),   # bo
            padv(jnp.ones((HIDDEN,), jnp.float32)),    # ln1 gamma
            padv(jnp.zeros((HIDDEN,), jnp.float32)),   # ln1 beta
            padv(jnp.zeros((FFN,), jnp.float32)),      # b1
            padv(jnp.zeros((HIDDEN,), jnp.float32)),   # b2
            padv(jnp.ones((HIDDEN,), jnp.float32)),    # ln2 gamma
            padv(jnp.zeros((HIDDEN,), jnp.float32)),   # ln2 beta
            padv(dec_b_row, CLS_PAD),                  # decoder bias (last layer only)
        ]
        rows += [jnp.zeros((D_PAD,), jnp.float32)] * (NUM_VEC_ROWS - len(rows))
        v_slab_l = jnp.stack(rows)                                     # (16, 128)

        w_layers.append(w_slab_l)
        v_layers.append(v_slab_l)

    return {
        "tok_emb": pad2(tok_emb, VOCAB_PAD, D_PAD).astype(jnp.float32),  # (128, 128) f32
        "pos_emb": pad2(pos_emb, SEQ, D_PAD).astype(jnp.float32),        # (8, 128)   f32
        "w_slab": jnp.stack(w_layers).astype(jnp.bfloat16),              # (L, 128, 896) bf16
        "v_slab": jnp.stack(v_layers).astype(jnp.float32),               # (L, 16, 128)  f32
    }


# ----------------------------- ModelWrapper.forward --------------------------------
def model_wrapper_forward(input_ids, params, layer_indexes):
    # TODO(synk): fused kernel specializes to layers='-1' (ModelWrapper default);
    # layers='all' would need per-layer CLS outputs + a wider decoder input.
    assert layer_indexes == [-1], "fused kernel implements layers='-1' only"

    ids = input_ids[0].astype(jnp.int32)                               # (SEQ,) -> SMEM prefetch

    scores_padded = fused_forward(ids, params["tok_emb"], params["pos_emb"],
                                  params["w_slab"], params["v_slab"])  # (SEQ, 128)

    index_of_CLS_token = 0 if INITIAL_CLS_TOKEN else input_ids.shape[1] - 1
    label_scores = scores_padded[index_of_CLS_token, :NUM_CLASSES]
    return jnp.reshape(label_scores, (1, NUM_CLASSES))


# ----------------------------- main ------------------------------------------------
if __name__ == "__main__":
    layer_indexes = [int(x) for x in LAYERS_ARG.split(",")]             # '-1' -> [-1]

    key = jax.random.PRNGKey(0)
    pkey, ikey = jax.random.split(key)
    params = init_params(pkey)
    input_ids = jax.random.randint(ikey, (1, SEQ), 0, VOCAB, dtype=jnp.int32)

    fwd = jax.jit(lambda ids, p: model_wrapper_forward(ids, p, layer_indexes))
    out = jax.block_until_ready(fwd(input_ids, params))

    assert out.shape == (1, NUM_CLASSES), out.shape
    assert out.dtype == jnp.float32
    assert bool(jnp.all(jnp.isfinite(out)))
    print("KERNEL_OK")
</pallas_src>

<mosaic_0001>
module attributes {stable_mosaic.version = 11 : i64} {
  func.func @fused_forward_kernel(%arg0: i32, %arg1: memref<8xi32, #tpu.memory_space<smem>>, %arg2: memref<128x128xf32, #tpu.memory_space<vmem>>, %arg3: memref<8x128xf32, #tpu.memory_space<vmem>>, %arg4: memref<2x128x896xbf16, #tpu.memory_space<vmem>>, %arg5: memref<2x16x128xf32, #tpu.memory_space<vmem>>, %arg6: memref<8x128xf32, #tpu.memory_space<vmem>>) attributes {dimension_semantics = [#tpu.dimension_semantics<arbitrary>], iteration_bounds = array<i64: 1>, scalar_prefetch = 1 : i64, scratch_operands = 0 : i64, tpu.core_type = #tpu.core_type<tc>, window_params = [{pipeline_mode = #tpu.pipeline_mode<synchronous>, transform_indices = @transform_0, window_bounds = array<i64: 128, 128>}, {pipeline_mode = #tpu.pipeline_mode<synchronous>, transform_indices = @transform_1, window_bounds = array<i64: 8, 128>}, {pipeline_mode = #tpu.pipeline_mode<synchronous>, transform_indices = @transform_2, window_bounds = array<i64: 2, 128, 896>}, {pipeline_mode = #tpu.pipeline_mode<synchronous>, transform_indices = @transform_3, window_bounds = array<i64: 2, 16, 128>}, {pipeline_mode = #tpu.pipeline_mode<synchronous>, transform_indices = @transform_4, window_bounds = array<i64: 8, 128>}]} {
    %0 = tpu.iota {dimensions = array<i32: 0>} : vector<8x128xi32>
    %1 = tpu.iota {dimensions = array<i32: 1>} : vector<8x128xi32>
    %c0_i32 = arith.constant 0 : i32
    %2 = vector.broadcast %c0_i32 : i32 to vector<8x128xi32>
    %c0_i32_0 = arith.constant 0 : i32
    %3 = vector.broadcast %c0_i32_0 : i32 to vector<8x128xi32>
    %4 = arith.cmpi eq, %0, %3 : vector<8x128xi32>
    %c0 = arith.constant 0 : index
    %5 = memref.load %arg1[%c0] : memref<8xi32, #tpu.memory_space<smem>>
    %6 = vector.broadcast %5 : i32 to vector<8x128xi32>
    %7 = arith.select %4, %6, %2 : vector<8x128xi1>, vector<8x128xi32>
    %c1_i32 = arith.constant 1 : i32
    %8 = vector.broadcast %c1_i32 : i32 to vector<8x128xi32>
    %9 = arith.cmpi eq, %0, %8 : vector<8x128xi32>
    %c1 = arith.constant 1 : index
    %10 = memref.load %arg1[%c1] : memref<8xi32, #tpu.memory_space<smem>>
    %11 = vector.broadcast %10 : i32 to vector<8x128xi32>
    %12 = arith.select %9, %11, %7 : vector<8x128xi1>, vector<8x128xi32>
    %c2_i32 = arith.constant 2 : i32
    %13 = vector.broadcast %c2_i32 : i32 to vector<8x128xi32>
    %14 = arith.cmpi eq, %0, %13 : vector<8x128xi32>
    %c2 = arith.constant 2 : index
    %15 = memref.load %arg1[%c2] : memref<8xi32, #tpu.memory_space<smem>>
    %16 = vector.broadcast %15 : i32 to vector<8x128xi32>
    %17 = arith.select %14, %16, %12 : vector<8x128xi1>, vector<8x128xi32>
    %c3_i32 = arith.constant 3 : i32
    %18 = vector.broadcast %c3_i32 : i32 to vector<8x128xi32>
    %19 = arith.cmpi eq, %0, %18 : vector<8x128xi32>
    %c3 = arith.constant 3 : index
    %20 = memref.load %arg1[%c3] : memref<8xi32, #tpu.memory_space<smem>>
    %21 = vector.broadcast %20 : i32 to vector<8x128xi32>
    %22 = arith.select %19, %21, %17 : vector<8x128xi1>, vector<8x128xi32>
    %c4_i32 = arith.constant 4 : i32
    %23 = vector.broadcast %c4_i32 : i32 to vector<8x128xi32>
    %24 = arith.cmpi eq, %0, %23 : vector<8x128xi32>
    %c4 = arith.constant 4 : index
    %25 = memref.load %arg1[%c4] : memref<8xi32, #tpu.memory_space<smem>>
    %26 = vector.broadcast %25 : i32 to vector<8x128xi32>
    %27 = arith.select %24, %26, %22 : vector<8x128xi1>, vector<8x128xi32>
    %c5_i32 = arith.constant 5 : i32
    %28 = vector.broadcast %c5_i32 : i32 to vector<8x128xi32>
    %29 = arith.cmpi eq, %0, %28 : vector<8x128xi32>
    %c5 = arith.constant 5 : index
    %30 = memref.load %arg1[%c5] : memref<8xi32, #tpu.memory_space<smem>>
    %31 = vector.broadcast %30 : i32 to vector<8x128xi32>
    %32 = arith.select %29, %31, %27 : vector<8x128xi1>, vector<8x128xi32>
    %c6_i32 = arith.constant 6 : i32
    %33 = vector.broadcast %c6_i32 : i32 to vector<8x128xi32>
    %34 = arith.cmpi eq, %0, %33 : vector<8x128xi32>
    %c6 = arith.constant 6 : index
    %35 = memref.load %arg1[%c6] : memref<8xi32, #tpu.memory_space<smem>>
    %36 = vector.broadcast %35 : i32 to vector<8x128xi32>
    %37 = arith.select %34, %36, %32 : vector<8x128xi1>, vector<8x128xi32>
    %c7_i32 = arith.constant 7 : i32
    %38 = vector.broadcast %c7_i32 : i32 to vector<8x128xi32>
    %39 = arith.cmpi eq, %0, %38 : vector<8x128xi32>
    %c7 = arith.constant 7 : index
    %40 = memref.load %arg1[%c7] : memref<8xi32, #tpu.memory_space<smem>>
    %41 = vector.broadcast %40 : i32 to vector<8x128xi32>
    %42 = arith.select %39, %41, %37 : vector<8x128xi1>, vector<8x128xi32>
    %43 = arith.cmpi eq, %1, %42 : vector<8x128xi32>
    %44 = arith.extui %43 : vector<8x128xi1> to vector<8x128xi32>
    %45 = arith.sitofp %44 : vector<8x128xi32> to vector<8x128xf32>
    %c0_1 = arith.constant 0 : index
    %c0_2 = arith.constant 0 : index
    %46 = vector.load %arg2[%c0_1, %c0_2] : memref<128x128xf32, #tpu.memory_space<vmem>>, vector<128x128xf32>
    %cst = arith.constant dense<0.000000e+00> : vector<8x128xf32>
    %47 = tpu.matmul %45, %46, %cst {dimension_numbers = #tpu.dot_dimension_numbers<[1], [0], [0], [1], [0, 0, 1, 1], [], []>} : vector<8x128xf32>, vector<128x128xf32>, vector<8x128xf32> -> vector<8x128xf32>
    %c0_3 = arith.constant 0 : index
    %c0_4 = arith.constant 0 : index
    %48 = vector.load %arg3[%c0_3, %c0_4] : memref<8x128xf32, #tpu.memory_space<vmem>>, vector<8x128xf32>
    %49 = arith.addf %47, %48 : vector<8x128xf32>
    %50 = tpu.iota {dimensions = array<i32: 1>} : vector<1x128xi32>
    %c32_i32 = arith.constant 32 : i32
    %51 = vector.broadcast %c32_i32 : i32 to vector<1x128xi32>
    %52 = arith.cmpi slt, %50, %51 : vector<1x128xi32>
    %53 = arith.extui %52 : vector<1x128xi1> to vector<1x128xi32>
    %54 = arith.sitofp %53 : vector<1x128xi32> to vector<1x128xf32>
    %c0_5 = arith.constant 0 : index
    %c0_6 = arith.constant 0 : index
    %c0_7 = arith.constant 0 : index
    %55 = vector.load %arg5[%c0_5, %c0_6, %c0_7] : memref<2x16x128xf32, #tpu.memory_space<vmem>>, vector<1x16x128xf32>
    %56 = vector.shape_cast %55 : vector<1x16x128xf32> to vector<16x128xf32>
    %57 = arith.truncf %49 : vector<8x128xf32> to vector<8x128xbf16>
    %c0_8 = arith.constant 0 : index
    %c0_9 = arith.constant 0 : index
    %c0_10 = arith.constant 0 : index
    %58 = vector.load %arg4[%c0_8, %c0_9, %c0_10] : memref<2x128x896xbf16, #tpu.memory_space<vmem>>, vector<1x128x384xbf16>
    %59 = vector.shape_cast %58 : vector<1x128x384xbf16> to vector<128x384xbf16>
    %cst_11 = arith.constant dense<0.000000e+00> : vector<8x384xf32>
    %60 = tpu.matmul %57, %59, %cst_11 {dimension_numbers = #tpu.dot_dimension_numbers<[1], [0], [0], [1], [0, 0, 1, 1], [], []>} : vector<8x128xbf16>, vector<128x384xbf16>, vector<8x384xf32> -> vector<8x384xf32>
    %61 = vector.extract_strided_slice %60 {offsets = [0, 0], sizes = [8, 128], strides = [1, 1]} : vector<8x384xf32> to vector<8x128xf32>
    %62 = vector.extract_strided_slice %56 {offsets = [0, 0], sizes = [1, 128], strides = [1, 1]} : vector<16x128xf32> to vector<1x128xf32>
    %63 = vector.broadcast %62 : vector<1x128xf32> to vector<8x128xf32>
    %64 = arith.addf %61, %63 : vector<8x128xf32>
    %65 = vector.extract_strided_slice %60 {offsets = [0, 128], sizes = [8, 128], strides = [1, 1]} : vector<8x384xf32> to vector<8x128xf32>
    %66 = vector.extract_strided_slice %56 {offsets = [1, 0], sizes = [1, 128], strides = [1, 1]} : vector<16x128xf32> to vector<1x128xf32>
    %67 = vector.broadcast %66 : vector<1x128xf32> to vector<8x128xf32>
    %68 = arith.addf %65, %67 : vector<8x128xf32>
    %69 = vector.extract_strided_slice %60 {offsets = [0, 256], sizes = [8, 128], strides = [1, 1]} : vector<8x384xf32> to vector<8x128xf32>
    %70 = vector.extract_strided_slice %56 {offsets = [2, 0], sizes = [1, 128], strides = [1, 1]} : vector<16x128xf32> to vector<1x128xf32>
    %71 = vector.broadcast %70 : vector<1x128xf32> to vector<8x128xf32>
    %72 = arith.addf %69, %71 : vector<8x128xf32>
    %73 = arith.truncf %64 : vector<8x128xf32> to vector<8x128xbf16>
    %74 = arith.truncf %68 : vector<8x128xf32> to vector<8x128xbf16>
    %cst_12 = arith.constant dense<0.000000e+00> : vector<8x8xf32>
    %75 = tpu.matmul %73, %74, %cst_12 {dimension_numbers = #tpu.dot_dimension_numbers<[1], [1], [0], [0], [0, 0, 1, 0], [], []>} : vector<8x128xbf16>, vector<8x128xbf16>, vector<8x8xf32> -> vector<8x8xf32>
    %cst_13 = arith.constant 0.176776692 : f32
    %76 = vector.broadcast %cst_13 : f32 to vector<8x8xf32>
    %77 = arith.mulf %75, %76 : vector<8x8xf32>
    %cst_14 = arith.constant dense<0xFF800000> : vector<8xf32>
    %78 = vector.multi_reduction <maximumf>, %77, %cst_14 [1] : vector<8x8xf32> to vector<8xf32>
    %79 = vector.shape_cast %78 : vector<8xf32> to vector<8x1xf32>
    %80 = vector.broadcast %79 : vector<8x1xf32> to vector<8x8xf32>
    %81 = arith.subf %77, %80 : vector<8x8xf32>
    %82 = math.exp %81 : vector<8x8xf32>
    %cst_15 = arith.constant dense<0.000000e+00> : vector<8xf32>
    %83 = vector.multi_reduction <add>, %82, %cst_15 [1] : vector<8x8xf32> to vector<8xf32>
    %84 = vector.shape_cast %83 : vector<8xf32> to vector<8x1xf32>
    %85 = vector.broadcast %84 : vector<8x1xf32> to vector<8x8xf32>
    %86 = arith.divf %82, %85 : vector<8x8xf32>
    %87 = arith.truncf %86 : vector<8x8xf32> to vector<8x8xbf16>
    %88 = arith.truncf %72 : vector<8x128xf32> to vector<8x128xbf16>
    %cst_16 = arith.constant dense<0.000000e+00> : vector<8x128xf32>
    %89 = tpu.matmul %87, %88, %cst_16 {dimension_numbers = #tpu.dot_dimension_numbers<[1], [0], [0], [1], [0, 0, 1, 1], [], []>} : vector<8x8xbf16>, vector<8x128xbf16>, vector<8x128xf32> -> vector<8x128xf32>
    %90 = arith.truncf %89 : vector<8x128xf32> to vector<8x128xbf16>
    %c0_17 = arith.constant 0 : index
    %c0_18 = arith.constant 0 : index
    %c384 = arith.constant 384 : index
    %91 = vector.load %arg4[%c0_17, %c0_18, %c384] : memref<2x128x896xbf16, #tpu.memory_space<vmem>>, vector<1x128x128xbf16>
    %92 = vector.shape_cast %91 : vector<1x128x128xbf16> to vector<128x128xbf16>
    %cst_19 = arith.constant dense<0.000000e+00> : vector<8x128xf32>
    %93 = tpu.matmul %90, %92, %cst_19 {dimension_numbers = #tpu.dot_dimension_numbers<[1], [0], [0], [1], [0, 0, 1, 1], [], []>} : vector<8x128xbf16>, vector<128x128xbf16>, vector<8x128xf32> -> vector<8x128xf32>
    %94 = vector.extract_strided_slice %56 {offsets = [3, 0], sizes = [1, 128], strides = [1, 1]} : vector<16x128xf32> to vector<1x128xf32>
    %95 = vector.broadcast %94 : vector<1x128xf32> to vector<8x128xf32>
    %96 = arith.addf %93, %95 : vector<8x128xf32>
    %97 = arith.addf %49, %96 : vector<8x128xf32>
    %98 = vector.extract_strided_slice %56 {offsets = [4, 0], sizes = [1, 128], strides = [1, 1]} : vector<16x128xf32> to vector<1x128xf32>
    %99 = vector.extract_strided_slice %56 {offsets = [5, 0], sizes = [1, 128], strides = [1, 1]} : vector<16x128xf32> to vector<1x128xf32>
    %cst_20 = arith.constant dense<0.000000e+00> : vector<8xf32>
    %100 = vector.multi_reduction <add>, %97, %cst_20 [1] : vector<8x128xf32> to vector<8xf32>
    %101 = vector.shape_cast %100 : vector<8xf32> to vector<8x1xf32>
    %cst_21 = arith.constant 3.125000e-02 : f32
    %102 = vector.broadcast %cst_21 : f32 to vector<8x1xf32>
    %103 = arith.mulf %101, %102 : vector<8x1xf32>
    %104 = vector.broadcast %103 : vector<8x1xf32> to vector<8x128xf32>
    %105 = arith.subf %97, %104 : vector<8x128xf32>
    %106 = vector.broadcast %54 : vector<1x128xf32> to vector<8x128xf32>
    %107 = arith.mulf %105, %106 : vector<8x128xf32>
    %108 = arith.mulf %107, %107 : vector<8x128xf32>
    %cst_22 = arith.constant dense<0.000000e+00> : vector<8xf32>
    %109 = vector.multi_reduction <add>, %108, %cst_22 [1] : vector<8x128xf32> to vector<8xf32>
    %110 = vector.shape_cast %109 : vector<8xf32> to vector<8x1xf32>
    %cst_23 = arith.constant 3.125000e-02 : f32
    %111 = vector.broadcast %cst_23 : f32 to vector<8x1xf32>
    %112 = arith.mulf %110, %111 : vector<8x1xf32>
    %cst_24 = arith.constant 9.99999974E-6 : f32
    %113 = vector.broadcast %cst_24 : f32 to vector<8x1xf32>
    %114 = arith.addf %112, %113 : vector<8x1xf32>
    %115 = math.rsqrt %114 : vector<8x1xf32>
    %116 = vector.broadcast %115 : vector<8x1xf32> to vector<8x128xf32>
    %117 = arith.mulf %107, %116 : vector<8x128xf32>
    %118 = vector.broadcast %98 : vector<1x128xf32> to vector<8x128xf32>
    %119 = arith.mulf %117, %118 : vector<8x128xf32>
    %120 = vector.broadcast %99 : vector<1x128xf32> to vector<8x128xf32>
    %121 = arith.addf %119, %120 : vector<8x128xf32>
    %122 = arith.truncf %121 : vector<8x128xf32> to vector<8x128xbf16>
    %c0_25 = arith.constant 0 : index
    %c0_26 = arith.constant 0 : index
    %c512 = arith.constant 512 : index
    %123 = vector.load %arg4[%c0_25, %c0_26, %c512] : memref<2x128x896xbf16, #tpu.memory_space<vmem>>, vector<1x128x128xbf16>
    %124 = vector.shape_cast %123 : vector<1x128x128xbf16> to vector<128x128xbf16>
    %cst_27 = arith.constant dense<0.000000e+00> : vector<8x128xf32>
    %125 = tpu.matmul %122, %124, %cst_27 {dimension_numbers = #tpu.dot_dimension_numbers<[1], [0], [0], [1], [0, 0, 1, 1], [], []>} : vector<8x128xbf16>, vector<128x128xbf16>, vector<8x128xf32> -> vector<8x128xf32>
    %126 = vector.extract_strided_slice %56 {offsets = [6, 0], sizes = [1, 128], strides = [1, 1]} : vector<16x128xf32> to vector<1x128xf32>
    %127 = vector.broadcast %126 : vector<1x128xf32> to vector<8x128xf32>
    %128 = arith.addf %125, %127 : vector<8x128xf32>
    %cst_28 = arith.constant 5.000000e-01 : f32
    %129 = vector.broadcast %cst_28 : f32 to vector<8x128xf32>
    %130 = arith.mulf %129, %128 : vector<8x128xf32>
    %cst_29 = arith.constant 4.471500e-02 : f32
    %131 = vector.broadcast %cst_29 : f32 to vector<8x128xf32>
    %132 = arith.mulf %131, %128 : vector<8x128xf32>
    %133 = arith.mulf %132, %128 : vector<8x128xf32>
    %134 = arith.mulf %133, %128 : vector<8x128xf32>
    %135 = arith.addf %128, %134 : vector<8x128xf32>
    %cst_30 = arith.constant 0.797884583 : f32
    %136 = vector.broadcast %cst_30 : f32 to vector<8x128xf32>
    %137 = arith.mulf %136, %135 : vector<8x128xf32>
    %138 = math.tanh %137 : vector<8x128xf32>
    %cst_31 = arith.constant 1.000000e+00 : f32
    %139 = vector.broadcast %cst_31 : f32 to vector<8x128xf32>
    %140 = arith.addf %139, %138 : vector<8x128xf32>
    %141 = arith.mulf %130, %140 : vector<8x128xf32>
    %142 = arith.truncf %141 : vector<8x128xf32> to vector<8x128xbf16>
    %c0_32 = arith.constant 0 : index
    %c0_33 = arith.constant 0 : index
    %c640 = arith.constant 640 : index
    %143 = vector.load %arg4[%c0_32, %c0_33, %c640] : memref<2x128x896xbf16, #tpu.memory_space<vmem>>, vector<1x128x128xbf16>
    %144 = vector.shape_cast %143 : vector<1x128x128xbf16> to vector<128x128xbf16>
    %cst_34 = arith.constant dense<0.000000e+00> : vector<8x128xf32>
    %145 = tpu.matmul %142, %144, %cst_34 {dimension_numbers = #tpu.dot_dimension_numbers<[1], [0], [0], [1], [0, 0, 1, 1], [], []>} : vector<8x128xbf16>, vector<128x128xbf16>, vector<8x128xf32> -> vector<8x128xf32>
    %146 = vector.extract_strided_slice %56 {offsets = [7, 0], sizes = [1, 128], strides = [1, 1]} : vector<16x128xf32> to vector<1x128xf32>
    %147 = vector.broadcast %146 : vector<1x128xf32> to vector<8x128xf32>
    %148 = arith.addf %145, %147 : vector<8x128xf32>
    %149 = arith.addf %121, %148 : vector<8x128xf32>
    %150 = vector.extract_strided_slice %56 {offsets = [8, 0], sizes = [1, 128], strides = [1, 1]} : vector<16x128xf32> to vector<1x128xf32>
    %151 = vector.extract_strided_slice %56 {offsets = [9, 0], sizes = [1, 128], strides = [1, 1]} : vector<16x128xf32> to vector<1x128xf32>
    %cst_35 = arith.constant dense<0.000000e+00> : vector<8xf32>
    %152 = vector.multi_reduction <add>, %149, %cst_35 [1] : vector<8x128xf32> to vector<8xf32>
    %153 = vector.shape_cast %152 : vector<8xf32> to vector<8x1xf32>
    %cst_36 = arith.constant 3.125000e-02 : f32
    %154 = vector.broadcast %cst_36 : f32 to vector<8x1xf32>
    %155 = arith.mulf %153, %154 : vector<8x1xf32>
    %156 = vector.broadcast %155 : vector<8x1xf32> to vector<8x128xf32>
    %157 = arith.subf %149, %156 : vector<8x128xf32>
    %158 = vector.broadcast %54 : vector<1x128xf32> to vector<8x128xf32>
    %159 = arith.mulf %157, %158 : vector<8x128xf32>
    %160 = arith.mulf %159, %159 : vector<8x128xf32>
    %cst_37 = arith.constant dense<0.000000e+00> : vector<8xf32>
    %161 = vector.multi_reduction <add>, %160, %cst_37 [1] : vector<8x128xf32> to vector<8xf32>
    %162 = vector.shape_cast %161 : vector<8xf32> to vector<8x1xf32>
    %cst_38 = arith.constant 3.125000e-02 : f32
    %163 = vector.broadcast %cst_38 : f32 to vector<8x1xf32>
    %164 = arith.mulf %162, %163 : vector<8x1xf32>
    %cst_39 = arith.constant 9.99999974E-6 : f32
    %165 = vector.broadcast %cst_39 : f32 to vector<8x1xf32>
    %166 = arith.addf %164, %165 : vector<8x1xf32>
    %167 = math.rsqrt %166 : vector<8x1xf32>
    %168 = vector.broadcast %167 : vector<8x1xf32> to vector<8x128xf32>
    %169 = arith.mulf %159, %168 : vector<8x128xf32>
    %170 = vector.broadcast %150 : vector<1x128xf32> to vector<8x128xf32>
    %171 = arith.mulf %169, %170 : vector<8x128xf32>
    %172 = vector.broadcast %151 : vector<1x128xf32> to vector<8x128xf32>
    %173 = arith.addf %171, %172 : vector<8x128xf32>
    %c1_40 = arith.constant 1 : index
    %c0_41 = arith.constant 0 : index
    %c0_42 = arith.constant 0 : index
    %174 = vector.load %arg5[%c1_40, %c0_41, %c0_42] : memref<2x16x128xf32, #tpu.memory_space<vmem>>, vector<1x16x128xf32>
    %175 = vector.shape_cast %174 : vector<1x16x128xf32> to vector<16x128xf32>
    %176 = arith.truncf %173 : vector<8x128xf32> to vector<8x128xbf16>
    %c1_43 = arith.constant 1 : index
    %c0_44 = arith.constant 0 : index
    %c0_45 = arith.constant 0 : index
    %177 = vector.load %arg4[%c1_43, %c0_44, %c0_45] : memref<2x128x896xbf16, #tpu.memory_space<vmem>>, vector<1x128x384xbf16>
    %178 = vector.shape_cast %177 : vector<1x128x384xbf16> to vector<128x384xbf16>
    %cst_46 = arith.constant dense<0.000000e+00> : vector<8x384xf32>
    %179 = tpu.matmul %176, %178, %cst_46 {dimension_numbers = #tpu.dot_dimension_numbers<[1], [0], [0], [1], [0, 0, 1, 1], [], []>} : vector<8x128xbf16>, vector<128x384xbf16>, vector<8x384xf32> -> vector<8x384xf32>
    %180 = vector.extract_strided_slice %179 {offsets = [0, 0], sizes = [8, 128], strides = [1, 1]} : vector<8x384xf32> to vector<8x128xf32>
    %181 = vector.extract_strided_slice %175 {offsets = [0, 0], sizes = [1, 128], strides = [1, 1]} : vector<16x128xf32> to vector<1x128xf32>
    %182 = vector.broadcast %181 : vector<1x128xf32> to vector<8x128xf32>
    %183 = arith.addf %180, %182 : vector<8x128xf32>
    %184 = vector.extract_strided_slice %179 {offsets = [0, 128], sizes = [8, 128], strides = [1, 1]} : vector<8x384xf32> to vector<8x128xf32>
    %185 = vector.extract_strided_slice %175 {offsets = [1, 0], sizes = [1, 128], strides = [1, 1]} : vector<16x128xf32> to vector<1x128xf32>
    %186 = vector.broadcast %185 : vector<1x128xf32> to vector<8x128xf32>
    %187 = arith.addf %184, %186 : vector<8x128xf32>
    %188 = vector.extract_strided_slice %179 {offsets = [0, 256], sizes = [8, 128], strides = [1, 1]} : vector<8x384xf32> to vector<8x128xf32>
    %189 = vector.extract_strided_slice %175 {offsets = [2, 0], sizes = [1, 128], strides = [1, 1]} : vector<16x128xf32> to vector<1x128xf32>
    %190 = vector.broadcast %189 : vector<1x128xf32> to vector<8x128xf32>
    %191 = arith.addf %188, %190 : vector<8x128xf32>
    %192 = arith.truncf %183 : vector<8x128xf32> to vector<8x128xbf16>
    %193 = arith.truncf %187 : vector<8x128xf32> to vector<8x128xbf16>
    %cst_47 = arith.constant dense<0.000000e+00> : vector<8x8xf32>
    %194 = tpu.matmul %192, %193, %cst_47 {dimension_numbers = #tpu.dot_dimension_numbers<[1], [1], [0], [0], [0, 0, 1, 0], [], []>} : vector<8x128xbf16>, vector<8x128xbf16>, vector<8x8xf32> -> vector<8x8xf32>
    %cst_48 = arith.constant 0.176776692 : f32
    %195 = vector.broadcast %cst_48 : f32 to vector<8x8xf32>
    %196 = arith.mulf %194, %195 : vector<8x8xf32>
    %cst_49 = arith.constant dense<0xFF800000> : vector<8xf32>
    %197 = vector.multi_reduction <maximumf>, %196, %cst_49 [1] : vector<8x8xf32> to vector<8xf32>
    %198 = vector.shape_cast %197 : vector<8xf32> to vector<8x1xf32>
    %199 = vector.broadcast %198 : vector<8x1xf32> to vector<8x8xf32>
    %200 = arith.subf %196, %199 : vector<8x8xf32>
    %201 = math.exp %200 : vector<8x8xf32>
    %cst_50 = arith.constant dense<0.000000e+00> : vector<8xf32>
    %202 = vector.multi_reduction <add>, %201, %cst_50 [1] : vector<8x8xf32> to vector<8xf32>
    %203 = vector.shape_cast %202 : vector<8xf32> to vector<8x1xf32>
    %204 = vector.broadcast %203 : vector<8x1xf32> to vector<8x8xf32>
    %205 = arith.divf %201, %204 : vector<8x8xf32>
    %206 = arith.truncf %205 : vector<8x8xf32> to vector<8x8xbf16>
    %207 = arith.truncf %191 : vector<8x128xf32> to vector<8x128xbf16>
    %cst_51 = arith.constant dense<0.000000e+00> : vector<8x128xf32>
    %208 = tpu.matmul %206, %207, %cst_51 {dimension_numbers = #tpu.dot_dimension_numbers<[1], [0], [0], [1], [0, 0, 1, 1], [], []>} : vector<8x8xbf16>, vector<8x128xbf16>, vector<8x128xf32> -> vector<8x128xf32>
    %209 = arith.truncf %208 : vector<8x128xf32> to vector<8x128xbf16>
    %c1_52 = arith.constant 1 : index
    %c0_53 = arith.constant 0 : index
    %c384_54 = arith.constant 384 : index
    %210 = vector.load %arg4[%c1_52, %c0_53, %c384_54] : memref<2x128x896xbf16, #tpu.memory_space<vmem>>, vector<1x128x128xbf16>
    %211 = vector.shape_cast %210 : vector<1x128x128xbf16> to vector<128x128xbf16>
    %cst_55 = arith.constant dense<0.000000e+00> : vector<8x128xf32>
    %212 = tpu.matmul %209, %211, %cst_55 {dimension_numbers = #tpu.dot_dimension_numbers<[1], [0], [0], [1], [0, 0, 1, 1], [], []>} : vector<8x128xbf16>, vector<128x128xbf16>, vector<8x128xf32> -> vector<8x128xf32>
    %213 = vector.extract_strided_slice %175 {offsets = [3, 0], sizes = [1, 128], strides = [1, 1]} : vector<16x128xf32> to vector<1x128xf32>
    %214 = vector.broadcast %213 : vector<1x128xf32> to vector<8x128xf32>
    %215 = arith.addf %212, %214 : vector<8x128xf32>
    %216 = arith.addf %173, %215 : vector<8x128xf32>
    %217 = vector.extract_strided_slice %175 {offsets = [4, 0], sizes = [1, 128], strides = [1, 1]} : vector<16x128xf32> to vector<1x128xf32>
    %218 = vector.extract_strided_slice %175 {offsets = [5, 0], sizes = [1, 128], strides = [1, 1]} : vector<16x128xf32> to vector<1x128xf32>
    %cst_56 = arith.constant dense<0.000000e+00> : vector<8xf32>
    %219 = vector.multi_reduction <add>, %216, %cst_56 [1] : vector<8x128xf32> to vector<8xf32>
    %220 = vector.shape_cast %219 : vector<8xf32> to vector<8x1xf32>
    %cst_57 = arith.constant 3.125000e-02 : f32
    %221 = vector.broadcast %cst_57 : f32 to vector<8x1xf32>
    %222 = arith.mulf %220, %221 : vector<8x1xf32>
    %223 = vector.broadcast %222 : vector<8x1xf32> to vector<8x128xf32>
    %224 = arith.subf %216, %223 : vector<8x128xf32>
    %225 = vector.broadcast %54 : vector<1x128xf32> to vector<8x128xf32>
    %226 = arith.mulf %224, %225 : vector<8x128xf32>
    %227 = arith.mulf %226, %226 : vector<8x128xf32>
    %cst_58 = arith.constant dense<0.000000e+00> : vector<8xf32>
    %228 = vector.multi_reduction <add>, %227, %cst_58 [1] : vector<8x128xf32> to vector<8xf32>
    %229 = vector.shape_cast %228 : vector<8xf32> to vector<8x1xf32>
    %cst_59 = arith.constant 3.125000e-02 : f32
    %230 = vector.broadcast %cst_59 : f32 to vector<8x1xf32>
    %231 = arith.mulf %229, %230 : vector<8x1xf32>
    %cst_60 = arith.constant 9.99999974E-6 : f32
    %232 = vector.broadcast %cst_60 : f32 to vector<8x1xf32>
    %233 = arith.addf %231, %232 : vector<8x1xf32>
    %234 = math.rsqrt %233 : vector<8x1xf32>
    %235 = vector.broadcast %234 : vector<8x1xf32> to vector<8x128xf32>
    %236 = arith.mulf %226, %235 : vector<8x128xf32>
    %237 = vector.broadcast %217 : vector<1x128xf32> to vector<8x128xf32>
    %238 = arith.mulf %236, %237 : vector<8x128xf32>
    %239 = vector.broadcast %218 : vector<1x128xf32> to vector<8x128xf32>
    %240 = arith.addf %238, %239 : vector<8x128xf32>
    %241 = arith.truncf %240 : vector<8x128xf32> to vector<8x128xbf16>
    %c1_61 = arith.constant 1 : index
    %c0_62 = arith.constant 0 : index
    %c512_63 = arith.constant 512 : index
    %242 = vector.load %arg4[%c1_61, %c0_62, %c512_63] : memref<2x128x896xbf16, #tpu.memory_space<vmem>>, vector<1x128x128xbf16>
    %243 = vector.shape_cast %242 : vector<1x128x128xbf16> to vector<128x128xbf16>
    %cst_64 = arith.constant dense<0.000000e+00> : vector<8x128xf32>
    %244 = tpu.matmul %241, %243, %cst_64 {dimension_numbers = #tpu.dot_dimension_numbers<[1], [0], [0], [1], [0, 0, 1, 1], [], []>} : vector<8x128xbf16>, vector<128x128xbf16>, vector<8x128xf32> -> vector<8x128xf32>
    %245 = vector.extract_strided_slice %175 {offsets = [6, 0], sizes = [1, 128], strides = [1, 1]} : vector<16x128xf32> to vector<1x128xf32>
    %246 = vector.broadcast %245 : vector<1x128xf32> to vector<8x128xf32>
    %247 = arith.addf %244, %246 : vector<8x128xf32>
    %cst_65 = arith.constant 5.000000e-01 : f32
    %248 = vector.broadcast %cst_65 : f32 to vector<8x128xf32>
    %249 = arith.mulf %248, %247 : vector<8x128xf32>
    %cst_66 = arith.constant 4.471500e-02 : f32
    %250 = vector.broadcast %cst_66 : f32 to vector<8x128xf32>
    %251 = arith.mulf %250, %247 : vector<8x128xf32>
    %252 = arith.mulf %251, %247 : vector<8x128xf32>
    %253 = arith.mulf %252, %247 : vector<8x128xf32>
    %254 = arith.addf %247, %253 : vector<8x128xf32>
    %cst_67 = arith.constant 0.797884583 : f32
    %255 = vector.broadcast %cst_67 : f32 to vector<8x128xf32>
    %256 = arith.mulf %255, %254 : vector<8x128xf32>
    %257 = math.tanh %256 : vector<8x128xf32>
    %cst_68 = arith.constant 1.000000e+00 : f32
    %258 = vector.broadcast %cst_68 : f32 to vector<8x128xf32>
    %259 = arith.addf %258, %257 : vector<8x128xf32>
    %260 = arith.mulf %249, %259 : vector<8x128xf32>
    %261 = arith.truncf %260 : vector<8x128xf32> to vector<8x128xbf16>
    %c1_69 = arith.constant 1 : index
    %c0_70 = arith.constant 0 : index
    %c640_71 = arith.constant 640 : index
    %262 = vector.load %arg4[%c1_69, %c0_70, %c640_71] : memref<2x128x896xbf16, #tpu.memory_space<vmem>>, vector<1x128x128xbf16>
    %263 = vector.shape_cast %262 : vector<1x128x128xbf16> to vector<128x128xbf16>
    %cst_72 = arith.constant dense<0.000000e+00> : vector<8x128xf32>
    %264 = tpu.matmul %261, %263, %cst_72 {dimension_numbers = #tpu.dot_dimension_numbers<[1], [0], [0], [1], [0, 0, 1, 1], [], []>} : vector<8x128xbf16>, vector<128x128xbf16>, vector<8x128xf32> -> vector<8x128xf32>
    %265 = vector.extract_strided_slice %175 {offsets = [7, 0], sizes = [1, 128], strides = [1, 1]} : vector<16x128xf32> to vector<1x128xf32>
    %266 = vector.broadcast %265 : vector<1x128xf32> to vector<8x128xf32>
    %267 = arith.addf %264, %266 : vector<8x128xf32>
    %268 = arith.addf %240, %267 : vector<8x128xf32>
    %269 = vector.extract_strided_slice %175 {offsets = [8, 0], sizes = [1, 128], strides = [1, 1]} : vector<16x128xf32> to vector<1x128xf32>
    %270 = vector.extract_strided_slice %175 {offsets = [9, 0], sizes = [1, 128], strides = [1, 1]} : vector<16x128xf32> to vector<1x128xf32>
    %cst_73 = arith.constant dense<0.000000e+00> : vector<8xf32>
    %271 = vector.multi_reduction <add>, %268, %cst_73 [1] : vector<8x128xf32> to vector<8xf32>
    %272 = vector.shape_cast %271 : vector<8xf32> to vector<8x1xf32>
    %cst_74 = arith.constant 3.125000e-02 : f32
    %273 = vector.broadcast %cst_74 : f32 to vector<8x1xf32>
    %274 = arith.mulf %272, %273 : vector<8x1xf32>
    %275 = vector.broadcast %274 : vector<8x1xf32> to vector<8x128xf32>
    %276 = arith.subf %268, %275 : vector<8x128xf32>
    %277 = vector.broadcast %54 : vector<1x128xf32> to vector<8x128xf32>
    %278 = arith.mulf %276, %277 : vector<8x128xf32>
    %279 = arith.mulf %278, %278 : vector<8x128xf32>
    %cst_75 = arith.constant dense<0.000000e+00> : vector<8xf32>
    %280 = vector.multi_reduction <add>, %279, %cst_75 [1] : vector<8x128xf32> to vector<8xf32>
    %281 = vector.shape_cast %280 : vector<8xf32> to vector<8x1xf32>
    %cst_76 = arith.constant 3.125000e-02 : f32
    %282 = vector.broadcast %cst_76 : f32 to vector<8x1xf32>
    %283 = arith.mulf %281, %282 : vector<8x1xf32>
    %cst_77 = arith.constant 9.99999974E-6 : f32
    %284 = vector.broadcast %cst_77 : f32 to vector<8x1xf32>
    %285 = arith.addf %283, %284 : vector<8x1xf32>
    %286 = math.rsqrt %285 : vector<8x1xf32>
    %287 = vector.broadcast %286 : vector<8x1xf32> to vector<8x128xf32>
    %288 = arith.mulf %278, %287 : vector<8x128xf32>
    %289 = vector.broadcast %269 : vector<1x128xf32> to vector<8x128xf32>
    %290 = arith.mulf %288, %289 : vector<8x128xf32>
    %291 = vector.broadcast %270 : vector<1x128xf32> to vector<8x128xf32>
    %292 = arith.addf %290, %291 : vector<8x128xf32>
    %293 = arith.truncf %292 : vector<8x128xf32> to vector<8x128xbf16>
    %c1_78 = arith.constant 1 : index
    %c0_79 = arith.constant 0 : index
    %c768 = arith.constant 768 : index
    %294 = vector.load %arg4[%c1_78, %c0_79, %c768] : memref<2x128x896xbf16, #tpu.memory_space<vmem>>, vector<1x128x128xbf16>
    %295 = vector.shape_cast %294 : vector<1x128x128xbf16> to vector<128x128xbf16>
    %cst_80 = arith.constant dense<0.000000e+00> : vector<8x128xf32>
    %296 = tpu.matmul %293, %295, %cst_80 {dimension_numbers = #tpu.dot_dimension_numbers<[1], [0], [0], [1], [0, 0, 1, 1], [], []>} : vector<8x128xbf16>, vector<128x128xbf16>, vector<8x128xf32> -> vector<8x128xf32>
    %c1_81 = arith.constant 1 : index
    %c10 = arith.constant 10 : index
    %c0_82 = arith.constant 0 : index
    %297 = vector.load %arg5[%c1_81, %c10, %c0_82] : memref<2x16x128xf32, #tpu.memory_space<vmem>>, vector<1x1x128xf32>
    %298 = vector.shape_cast %297 : vector<1x1x128xf32> to vector<1x128xf32>
    %299 = vector.broadcast %298 : vector<1x128xf32> to vector<8x128xf32>
    %300 = arith.addf %296, %299 : vector<8x128xf32>
    %c0_83 = arith.constant 0 : index
    %c0_84 = arith.constant 0 : index
    %301 = vector.load %arg6[%c0_83, %c0_84] : memref<8x128xf32, #tpu.memory_space<vmem>>, vector<8x128xf32>
    tpu.vector_store %arg6[%c0_83, %c0_84], %300 {strides = array<i32>} : memref<8x128xf32, #tpu.memory_space<vmem>>, vector<8x128xf32>,
    return
  }
  func.func @transform_0(%arg0: i32, %arg1: memref<8xi32, #tpu.memory_space<smem>>) -> (i32, i32) {
    %c0_i32 = arith.constant 0 : i32
    %c0_i32_0 = arith.constant 0 : i32
    %c0_i32_1 = arith.constant 0 : i32
    return %c0_i32, %c0_i32_0 : i32, i32
  }
  func.func @transform_1(%arg0: i32, %arg1: memref<8xi32, #tpu.memory_space<smem>>) -> (i32, i32) {
    %c0_i32 = arith.constant 0 : i32
    %c0_i32_0 = arith.constant 0 : i32
    %c0_i32_1 = arith.constant 0 : i32
    return %c0_i32, %c0_i32_0 : i32, i32
  }
  func.func @transform_2(%arg0: i32, %arg1: memref<8xi32, #tpu.memory_space<smem>>) -> (i32, i32, i32) {
    %c0_i32 = arith.constant 0 : i32
    %c0_i32_0 = arith.constant 0 : i32
    %c0_i32_1 = arith.constant 0 : i32
    %c0_i32_2 = arith.constant 0 : i32
    return %c0_i32, %c0_i32_0, %c0_i32_1 : i32, i32, i32
  }
  func.func @transform_3(%arg0: i32, %arg1: memref<8xi32, #tpu.memory_space<smem>>) -> (i32, i32, i32) {
    %c0_i32 = arith.constant 0 : i32
    %c0_i32_0 = arith.constant 0 : i32
    %c0_i32_1 = arith.constant 0 : i32
    %c0_i32_2 = arith.constant 0 : i32
    return %c0_i32, %c0_i32_0, %c0_i32_1 : i32, i32, i32
  }
  func.func @transform_4(%arg0: i32, %arg1: memref<8xi32, #tpu.memory_space<smem>>) -> (i32, i32) {
    %c0_i32 = arith.constant 0 : i32
    %c0_i32_0 = arith.constant 0 : i32
    %c0_i32_1 = arith.constant 0 : i32
    return %c0_i32, %c0_i32_0 : i32, i32
  }
}

</mosaic_0001>

<bundles_post_ra>
// kernel: _lambda_.1
= control target key start
LH: loop header
LB: loop body
LE: loop exit
PB: predicated region body
PF: predicated region fallthrough
CT: control target
= control target key end

     0   :  { %s2836_s0 = inlined_call_operand.vmem [shape: s32[8], index: 0, kind: input, shape index: {}]   ;;  %s2837_s1 = inlined_call_operand.hbm [shape: f32[128,128], index: 1, kind: input, shape index: {}]   ;;  %s2838_s2 = inlined_call_operand.hbm [shape: f32[8,128], index: 2, kind: input, shape index: {}]   ;;  %s2839_s3 = inlined_call_operand.hbm [shape: bf16[2,128,896], index: 3, kind: input, shape index: {}]   ;;  %s2840_s4 = inlined_call_operand.hbm [shape: f32[2,16,128], index: 4, kind: input, shape index: {}]   ;;  %s2841_s5 = inlined_call_operand.vmem [shape: f32[8,128], index: 5, kind: output, shape index: {}]  }
   0x1   :  { %s10_s20 = sshll.u32 %s2836_s0, 4  ;;  %s11_s20 = int_to_ptr.vmem [resolvable:$true] %s10_s20 }
   0x2   :  { %s2430_s21 = scalar_lea.vmem %s11_s20, 16  ;;  %p2435_p1 = scmp.lt.s32.totalorder %s11_s20, %s11_s20 }
   0x3   :  { %p2431_p0 = scmp.ne.s32.totalorder %s11_s20, %s2430_s21  ;;  %p2436_p2 = scmp.lt.s32.totalorder %s2430_s21, %s2430_s21 }
   0x5   :  { %p2437_p3 = por %p2436_p2, %p2435_p1 }
   0x7   :  { %p2438_p4 = pnand %p2437_p3, %p2431_p0 }
   0x9   :  { %2441 = shalt.err (!%p2438_p4)  }
   0xa   :  { %s2530_s22 = smov [#allocation3]  }
   0xb   :  { %13 = dma.vmem_to_smem %s11_s20, 16, %s2530_s22, [#allocation2] }
   0xc   :  { %2522 = dma.done.wait [#allocation2], 16 }
   0xd   :  { %2523 = vsyncadd [#allocation2], 4294967280 }
   0xe   :  { %15 = sfence }
   0xf   :  { %16 = vsyncpa [#allocation5], 0 }
  0x10   :  { %17 = vsyncpa [#allocation7], 0 }
  0x11   :  { %18 = vsyncpa [#allocation10], 0  ;;  %s2531_s23 = smov [#allocation6]   ;;  %s2532_s25 = smov [#allocation4]  }
  0x12   :  { %s37_s24 = sshll.u32 %s2531_s23, 4  ;;  %s24_s0 = sshll.u32 %s2532_s25, 4  ;;  %s38_s24 = int_to_ptr.vmem [resolvable:$true] %s37_s24  ;;  %s25_s0 = int_to_ptr.vmem [resolvable:$true] %s24_s0 }
  0x13   :  { %s2450_s26 = scalar_lea.vmem %s38_s24, 128  ;;  %p2455_p6 = scmp.lt.s32.totalorder %s38_s24, %s38_s24 }
  0x14   :  { %p2451_p5 = scmp.ne.s32.totalorder %s38_s24, %s2450_s26  ;;  %p2456_p7 = scmp.lt.s32.totalorder %s2450_s26, %s2450_s26 }
  0x16   :  { %p2457_p8 = por %p2456_p7, %p2455_p6 }
  0x18   :  { %p2458_p9 = pnand %p2457_p8, %p2451_p5 }
  0x1a   :  { %2461 = shalt.err (!%p2458_p9)
}
  0x1b   :  { %40 = dma.hbm_to_vmem [thread:$0]  %s2838_s2, 128, %s38_s24, [#allocation7]  }
  0x1c   :  { %s2470_s29 = scalar_lea.vmem %s25_s0, 2048  ;;  %p2475_p11 = scmp.lt.s32.totalorder %s25_s0, %s25_s0 }
  0x1d   :  { %p2471_p10 = scmp.ne.s32.totalorder %s25_s0, %s2470_s29  ;;  %p2476_p12 = scmp.lt.s32.totalorder %s2470_s29, %s2470_s29 }
  0x1f   :  { %p2477_p13 = por %p2476_p12, %p2475_p11 }
  0x21   :  { %p2478_p0 = pnand %p2477_p13, %p2471_p10 }
  0x23   :  { %2481 = shalt.err (!%p2478_p0)
}
  0x24   :  { %s2533_s30 = smov 128   ;;  %s2534_s6 = smov 8  }
  0x25   :  { %30 = dma.hbm_to_vmem [thread:$0]  %s2837_s1, 2048, %s25_s0, [#allocation5], %s2533_s30, %s2533_s30, %s2534_s6  }
  0x26   :  { %s2535_s9 = smov [#allocation8]  }
  0x27   :  { %s46_s10 = sshll.u32 %s2535_s9, 4  ;;  %s47_s10 = int_to_ptr.vmem [resolvable:$true] %s46_s10 }
  0x28   :  { %s2490_s11 = scalar_lea.vmem %s47_s10, 14336  ;;  %p2495_p2 = scmp.lt.s32.totalorder %s47_s10, %s47_s10 }
  0x29   :  { %p2491_p1 = scmp.ne.s32.totalorder %s47_s10, %s2490_s11  ;;  %p2496_p3 = scmp.lt.s32.totalorder %s2490_s11, %s2490_s11 }
  0x2b   :  { %p2497_p4 = por %p2496_p3, %p2495_p2 }
  0x2d   :  { %p2498_p5 = pnand %p2497_p4, %p2491_p1 }
  0x2f   :  { %2501 = shalt.err (!%p2498_p5)
}
  0x30   :  { %s2536_s2 = smov 448   ;;  %s2537_s12 = smov 28  }
  0x31   :  { %52 = dma.hbm_to_vmem [thread:$0]  %s2839_s3, 14336, %s47_s10, [#allocation7], %s2536_s2, %s2536_s2, %s2537_s12  }
  0x32   :  { %s2538_s15 = smov [#allocation9]  }
  0x33   :  { %s58_s16 = sshll.u32 %s2538_s15, 4  ;;  %s59_s16 = int_to_ptr.vmem [resolvable:$true] %s58_s16 }
  0x34   :  { %s2510_s1 = scalar_lea.vmem %s59_s16, 512  ;;  %p2515_p7 = scmp.lt.s32.totalorder %s59_s16, %s59_s16 }
  0x35   :  { %p2511_p6 = scmp.ne.s32.totalorder %s59_s16, %s2510_s1  ;;  %p2516_p8 = scmp.lt.s32.totalorder %s2510_s1, %s2510_s1 }
  0x37   :  { %p2517_p9 = por %p2516_p8, %p2515_p7 }
  0x39   :  { %p2518_p10 = pnand %p2517_p9, %p2511_p6 }
  0x3b   :  { %2521 = shalt.err (!%p2518_p10)
}
  0x3c   :  { %64 = dma.hbm_to_vmem [thread:$0]  %s2840_s4, 512, %s59_s16, [#allocation10], %s2533_s30, %s2533_s30, %s2534_s6  }
  0x3d   :  { %2524 = dma.done.wait [#allocation5], 2048  }
  0x3e   :  { %2525 = vsyncadd [#allocation5], 4294965248 }
  0x3f   :  { %2526 = dma.done.wait [#allocation7], 14464  }
  0x40   :  { %2527 = vsyncadd [#allocation7], 4294952832 }
  0x41   :  { %2528 = dma.done.wait [#allocation10], 512  }
  0x42   :  { %2529 = vsyncadd [#allocation10], 4294966784  ;;  %v2539_v0 = vmov 0.0   ;;  %vm2540_vm0 = vmmov 0   ;;  %v78_v1 = vlaneseq  ;;  %s83_s3 = sld [smem:[#allocation3]]  ;;  %v132_v3 = vld [vmem:[#allocation4 + $0x78] sm:$0xff] }
  0x43   :  { %2038 = vmatprep.subr.mxu0 %v2539_v0  ;;  %2070 = vmatprep.mubr.msk.f32.mxu0 %vm2540_vm0, %v2539_v0  ;;  %s1815_s19 = sld [smem:[#allocation3 + $0x1]]  ;;  %v131_v4 = vld [vmem:[#allocation4 + $0x70] sm:$0xff]  ;;  %v130_v5 = vld [vmem:[#allocation4 + $0x68] sm:$0xff]  ;;  %v129_v7 = vld [vmem:[#allocation4 + $0x60] sm:$0xff]  ;;  %v2541_v52 = vmov 1.0   ;;  %v2542_v61 = vmov 0  }
  0x44   :  { %v2592_v2 = vshrl.u32 %v78_v1, 7  ;;  %s2594_s4 = sld [smem:[#allocation3 + $0x2]]  ;;  %2039 = vmatpush3.msra.mxu0 %v132_v3  ;;  %v128_v8 = vld [vmem:[#allocation4 + $0x58] sm:$0xff]  ;;  %v2290_v11 = vld [vmem:[#allocation8 + $0x18c] ss:$28 sps:$4 sm:$0xff]   ;;  %v126_v14 = vld [vmem:[#allocation4 + $0x48] sm:$0xff]  ;;  %402 = vmatprep.mubr.bf16.mxu1 %v2542_v61 }
  0x45   :  { %2040 = vmatprep.subr.mxu0 %v2539_v0  ;;  %s2598_s20 = sld [smem:[#allocation3 + $0x3]]  ;;  %v2292_v12 = vld [vmem:[#allocation8 + $0x188] ss:$28 sps:$4 sm:$0xff]   ;;  %370 = vmatprep.subr.bf16.mxu1 %v2290_v11  ;;  %v2294_v17 = vld [vmem:[#allocation8 + $0x154] ss:$28 sps:$4 sm:$0xff]   ;;  %v125_v22 = vld [vmem:[#allocation4 + $0x40] sm:$0xff] }
  0x46   :  { %vm82_vm1 = vcmp.eq.s32.totalorder %v2592_v2, 0  ;;  %2041 = vmatpush3.msra.mxu0 %v131_v4  ;;  %vm86_vm2 = vcmp.eq.s32.totalorder %v2592_v2, 1  ;;  %s2602_s21 = sld [smem:[#allocation3 + $0x4]]  ;;  %v127_v13 = vld [vmem:[#allocation4 + $0x50] sm:$0xff]  ;;  %vm90_vm3 = vcmp.eq.s32.totalorder %v2592_v2, 2  ;;  %371 = vmatpush1.bf16.msra.mxu1 %v2292_v12  ;;  %vm94_vm4 = vcmp.eq.s32.totalorder %v2592_v2, 3 }
  0x47   :  { %2042 = vmatprep.subr.mxu0 %v2539_v0  ;;  %s2608_s22 = sld [smem:[#allocation3 + $0x5]]  ;;  %v2296_v18 = vld [vmem:[#allocation8 + $0x150] ss:$28 sps:$4 sm:$0xff]   ;;  %372 = vmatprep.subr.bf16.mxu1 %v2294_v17  ;;  %v2298_v19 = vld [vmem:[#allocation8 + $0x11c] ss:$28 sps:$4 sm:$0xff]   ;;  %vm98_vm5 = vcmp.eq.s32.totalorder %v2592_v2, 4 }
  0x48   :  { %v84_v6 = vstv %s83_s3  ;;  %2043 = vmatpush3.msra.mxu0 %v130_v5  ;;  %s2614_s23 = sld [smem:[#allocation3 + $0x6]]  ;;  %v124_v23 = vld [vmem:[#allocation4 + $0x38] sm:$0xff]  ;;  %v2302_v27 = vld [vmem:[#allocation8 + $0xe4] ss:$28 sps:$4 sm:$0xff]   ;;  %v123_v28 = vld [vmem:[#allocation4 + $0x30] sm:$0xff]  ;;  %vm102_vm6 = vcmp.eq.s32.totalorder %v2592_v2, 5 }
  0x49   :  { %v85_v9 = vsel %vm82_vm1, %v84_v6, 0  ;;  %v88_v10 = vstv %s1815_s19  ;;  %2044 = vmatprep.subr.mxu0 %v2539_v0  ;;  %v2300_v24 = vld [vmem:[#allocation8 + $0x118] ss:$28 sps:$4 sm:$0xff]   ;;  %s2619_s24 = sld [smem:[#allocation3 + $0x7]]  ;;  %v122_v29 = vld [vmem:[#allocation4 + $0x28] sm:$0xff]  ;;  %vm106_vm7 = vcmp.eq.s32.totalorder %v2592_v2, 6 }
  0x4a   :  { %2045 = vmatpush3.msra.mxu0 %v129_v7  ;;  %v89_v15 = vsel %vm86_vm2, %v88_v10, %v85_v9  ;;  %v92_v16 = vstv %s2594_s4  ;;  %373 = vmatpush1.bf16.msra.mxu1 %v2296_v18  ;;  %v2304_v32 = vld [vmem:[#allocation8 + $0xe0] ss:$28 sps:$4 sm:$0xff]   ;;  %v2306_v33 = vld [vmem:[#allocation8 + $0xac] ss:$28 sps:$4 sm:$0xff]   ;;  %v120_v35 = vld [vmem:[#allocation4 + $0x18] sm:$0xff]  ;;  %v2630_v41 = vand.u32 127, %v78_v1 }
  0x4b   :  { %2046 = vmatprep.subr.mxu0 %v2539_v0  ;;  %v93_v20 = vsel %vm90_vm3, %v92_v16, %v89_v15  ;;  %v96_v21 = vstv %s2598_s20  ;;  %374 = vmatprep.subr.bf16.mxu1 %v2298_v19  ;;  %v121_v34 = vld [vmem:[#allocation4 + $0x20] sm:$0xff]  ;;  %v2308_v38 = vld [vmem:[#allocation8 + $0xa8] ss:$28 sps:$4 sm:$0xff]   ;;  %v2310_v39 = vld [vmem:[#allocation8 + $0x74] ss:$28 sps:$4 sm:$0xff]   ;;  %vm110_vm8 = vcmp.eq.s32.totalorder %v2592_v2, 7 }
  0x4c   :  { %2047 = vmatpush3.msra.mxu0 %v128_v8  ;;  %v97_v25 = vsel %vm94_vm4, %v96_v21, %v93_v20  ;;  %v100_v26 = vstv %s2602_s21  ;;  %v119_v40 = vld [vmem:[#allocation4 + $0x10] sm:$0xff]  ;;  %v118_v45 = vld [vmem:[#allocation4 + $0x8] sm:$0xff]  ;;  %v2314_v46 = vld [vmem:[#allocation8 + $0x3c] ss:$28 sps:$4 sm:$0xff]   ;;  %v2661_v5 = vsub.s32 1, %v2592_v2  ;;  %v463_v7 = vsub.s32 2, %v2592_v2 }
  0x4d   :  { %2048 = vmatprep.subr.mxu0 %v2539_v0  ;;  %v101_v30 = vsel %vm98_vm5, %v100_v26, %v97_v25  ;;  %v104_v31 = vstv %s2608_s22  ;;  %v2312_v44 = vld [vmem:[#allocation8 + $0x70] ss:$28 sps:$4 sm:$0xff]   ;;  %v117_v47 = vld [vmem:[#allocation4] sm:$0xff]  ;;  %v2305_v54 = vld [vmem:[#allocation8 + $0xe8] ss:$28 sps:$4 sm:$0xff]   ;;  %v2669_v10 = vsub.s32 0, %v2592_v2 }
  0x4e   :  { %2049 = vmatpush3.msra.mxu0 %v127_v13  ;;  %375 = vmatpush1.bf16.msra.mxu1 %v2300_v24  ;;  %v105_v36 = vsel %vm102_vm6, %v104_v31, %v101_v30  ;;  %v108_v37 = vstv %s2614_s23  ;;  %v2293_v49 = vld [vmem:[#allocation8 + $0x190] ss:$28 sps:$4 sm:$0xff]   ;;  %v2316_v50 = vld [vmem:[#allocation8 + $0x38] ss:$28 sps:$4 sm:$0xff]   ;;  %v2301_v53 = vld [vmem:[#allocation8 + $0x120] ss:$28 sps:$4 sm:$0xff]  }
  0x4f   :  { %2050 = vmatprep.subr.mxu0 %v2539_v0  ;;  %376 = vmatprep.subr.bf16.mxu1 %v2302_v27  ;;  %v109_v42 = vsel %vm106_vm7, %v108_v37, %v105_v36  ;;  %v112_v43 = vstv %s2619_s24  ;;  %v2297_v51 = vld [vmem:[#allocation8 + $0x158] ss:$28 sps:$4 sm:$0xff]   ;;  %v2309_v55 = vld [vmem:[#allocation8 + $0xb0] ss:$28 sps:$4 sm:$0xff]   ;;  %v2317_v57 = vld [vmem:[#allocation8 + $0x40] ss:$28 sps:$4 sm:$0xff]  }
  0x50   :  { %2051 = vmatpush3.msra.mxu0 %v126_v14  ;;  %v113_v48 = vsel %vm110_vm8, %v112_v43, %v109_v42  ;;  %v2313_v56 = vld [vmem:[#allocation8 + $0x78] ss:$28 sps:$4 sm:$0xff]   ;;  %v2318_v58 = vld [vmem:[#allocation8 + $0x4] ss:$28 sps:$4 sm:$0xff]   ;;  %vm526_vm10 = vcmask 1043456   ;;  %vm509_vm11 = vcmask 64512  }
  0x51   :  { %2052 = vmatprep.subr.mxu0 %v2539_v0  ;;  %vm114_vm9 = vcmp.eq.s32.totalorder %v2630_v41, %v113_v48  ;;  %v2320_v59 = vld [vmem:[#allocation8] ss:$28 sps:$4 sm:$0xff]   ;;  %v2321_v60 = vld [vmem:[#allocation8 + $0x8] ss:$28 sps:$4 sm:$0xff]   ;;  %v2322_v42 = vld [vmem:[#allocation8 + $0x194] ss:$28 sps:$4 sm:$0xff]  }
  0x52   :  { %2053 = vmatpush3.msra.mxu0 %v125_v22  ;;  %377 = vmatpush1.bf16.msra.mxu1 %v2304_v32  ;;  %v133_v62 = vld [vmem:[#allocation6] sm:$0xff]  ;;  %v2663_v6 = vld [vmem:[#allocation9] sm:$0xff]  ;;  %vm204_vm12 = vcmp.lt.s32.totalorder %v2630_v41, 32 }
  0x53   :  { %2054 = vmatprep.subr.mxu0 %v2539_v0  ;;  %378 = vmatprep.subr.bf16.mxu1 %v2306_v33  ;;  %v459_v8 = vrot.slane %v2663_v6, %v2661_v5  ;;  %v464_v12 = vrot.slane %v2663_v6, %v463_v7  ;;  %v454_v16 = vrot.slane %v2663_v6, %v2669_v10  ;;  %v2327_v48 = vld [vmem:[#allocation8 + $0x7c] ss:$28 sps:$4 sm:$0xff]  }
  0x54   :  { %2055 = vmatpush3.msra.mxu0 %v124_v23  ;;  %v2335_v41 = vld [vmem:[#allocation8 + $0x80] ss:$28 sps:$4 sm:$0xff]  }
  0x55   :  { %2056 = vmatprep.subr.mxu0 %v2539_v0 }
  0x56   :  { %2057 = vmatpush3.msra.mxu0 %v123_v28  ;;  %379 = vmatpush1.bf16.msra.mxu1 %v2308_v38 }
  0x57   :  { %2058 = vmatprep.subr.mxu0 %v2539_v0  ;;  %380 = vmatprep.subr.bf16.mxu1 %v2310_v39 }
  0x58   :  { %2059 = vmatpush3.msra.mxu0 %v122_v29 }
  0x59   :  { %2060 = vmatprep.subr.mxu0 %v2539_v0 }
  0x5a   :  { %2061 = vmatpush3.msra.mxu0 %v121_v34  ;;  %381 = vmatpush1.bf16.msra.mxu1 %v2312_v44  ;;  %v2323_v44 = vld [vmem:[#allocation8 + $0x15c] ss:$28 sps:$4 sm:$0xff]  }
  0x5b   :  { %2062 = vmatprep.subr.mxu0 %v2539_v0  ;;  %382 = vmatprep.subr.bf16.mxu1 %v2314_v46  ;;  %v2325_v46 = vld [vmem:[#allocation8 + $0xec] ss:$28 sps:$4 sm:$0xff]  }
  0x5c   :  { %2063 = vmatpush3.msra.mxu0 %v120_v35 }
  0x5d   :  { %2064 = vmatprep.subr.mxu0 %v2539_v0 }
  0x5e   :  { %2065 = vmatpush3.msra.mxu0 %v119_v40  ;;  %383 = vmatpush1.bf16.msra.mxu1 %v2316_v50  ;;  %v2329_v50 = vld [vmem:[#allocation8 + $0xc] ss:$28 sps:$4 sm:$0xff]  }
  0x5f   :  { %2066 = vmatprep.subr.mxu0 %v2539_v0  ;;  %384 = vmatprep.subr.bf16.mxu1 %v2318_v58 }
  0x60   :  { %2067 = vmatpush3.msra.mxu0 %v118_v45  ;;  %v2324_v45 = vld [vmem:[#allocation8 + $0x124] ss:$28 sps:$4 sm:$0xff]  }
  0x61   :  { %2068 = vmatprep.subr.mxu0 %v2539_v0 }
  0x62   :  { %2069 = vmatpush3.msra.mxu0 %v117_v47  ;;  %385 = vmatpush1.bf16.msra.mxu1 %v2320_v59  ;;  %v2326_v47 = vld [vmem:[#allocation8 + $0xb4] ss:$28 sps:$4 sm:$0xff]  }
  0x63   :  { %2071 = vmatmul.mubr.msk.f32.vlgmr.msra.gmra.mxu0 %vm114_vm9, %v2541_v52  ;;  %2073 = vmatprep.subr.bf16.mxu0 %v2539_v0 }
  0x64   :  { %2074 = vmatpush3.bf16.msra.mxu0 %v2293_v49  ;;  %2089 = vmatprep.mubr.msk.bf16.mxu0 %vm2540_vm0, %v2539_v0  ;;  %v2328_v49 = vld [vmem:[#allocation8 + $0x44] ss:$28 sps:$4 sm:$0xff]  }
  0x65   :  { %2075 = vmatprep.subr.bf16.mxu0 %v2539_v0  ;;  %2093 = vmatprep.subr.bf16.mxu1 %v2539_v0 }
  0x68   :  { %2076 = vmatpush3.bf16.msra.mxu0 %v2297_v51 }
  0x69   :  { %2077 = vmatprep.subr.bf16.mxu0 %v2539_v0 }
  0x6c   :  { %2078 = vmatpush3.bf16.msra.mxu0 %v2301_v53 }
  0x6d   :  { %2079 = vmatprep.subr.bf16.mxu0 %v2539_v0 }
  0x70   :  { %2080 = vmatpush3.bf16.msra.mxu0 %v2305_v54 }
  0x71   :  { %2081 = vmatprep.subr.bf16.mxu0 %v2539_v0 }
  0x74   :  { %2082 = vmatpush3.bf16.msra.mxu0 %v2309_v55 }
  0x75   :  { %2083 = vmatprep.subr.bf16.mxu0 %v2539_v0 }
  0x78   :  { %2084 = vmatpush3.bf16.msra.mxu0 %v2313_v56  ;;  %v589_v56 = vsub.s32 3, %v2592_v2 }
  0x79   :  { %2085 = vmatprep.subr.bf16.mxu0 %v2539_v0 }
  0x7c   :  { %2086 = vmatpush3.bf16.msra.mxu0 %v2317_v57  ;;  %v590_v57 = vrot.slane %v2663_v6, %v589_v56 }
  0x7d   :  { %2087 = vmatprep.subr.bf16.mxu0 %v2539_v0 }
  0x80   :  { %2088 = vmatpush3.bf16.msra.mxu0 %v2321_v60 }
  0x81   :  { %2125 = vmatprep.subr.bf16.mxu0 %v2539_v0 }
 0x123   :  { %v200_v63 = vpop.f32.mrf.mxu0 }
 0x124   :  { %v2652_v1 = vadd.f32 %v200_v63, %v133_v62 }
 0x125   :  { %v2072_v3 = vpop.f32.mrf.mxu0 }
 0x126   :  { %v209_v4 = vpack.c.bf16 %v2652_v1, %v2652_v1 }
 0x128   :  { %403 = vmatmul.mubr.bf16.vlgmr.msra.gmra.mxu1 %v209_v4  ;;  %2090 = vmatmul.mubr.bf16.vlgmr.msra.gmra.mxu0 %v209_v4  ;;  %v2330_v4 = vld [vmem:[#allocation8 + $0x198] ss:$28 sps:$4 sm:$0xff]  }
 0x129   :  { %2095 = vmatprep.mubr.msk.bf16.mxu1 %vm2540_vm0, %v2539_v0  ;;  %2141 = vmatprep.mubr.msk.bf16.mxu0 %vm2540_vm0, %v2539_v0 }
 0x12a   :  { %2126 = vmatpush3.bf16.msra.mxu0 %v2330_v4 }
 0x12b   :  { %2127 = vmatprep.subr.bf16.mxu0 %v2539_v0 }
 0x1e8   :  { %v404_v9 = vpop.f32.mrf.mxu1  ;;  %v445_v11 = vpop.f32.mrf.mxu0 }
 0x1e9   :  { %v465_v20 = vadd.f32 %v464_v12, %v445_v11  ;;  %v455_v23 = vadd.f32 %v454_v16, %v404_v9  ;;  %v2705_v12 = vsel %vm204_vm12, 1.0, %v2539_v0  ;;  %v2333_v16 = vld [vmem:[#allocation8 + $0xf0] ss:$28 sps:$4 sm:$0xff]  }
 0x1ea   :  { %v406_v13 = vpop.f32.mrf.mxu1  ;;  %v2091_v14 = vpop.f32.mrf.mxu0 }
 0x1eb   :  { %v460_v15 = vadd.f32 %v459_v8, %v406_v13  ;;  %v522_v24 = vpack.c.bf16 %v465_v20, %v465_v20  ;;  %v466_v25 = vpack.c.bf16 %v455_v23, %v455_v23  ;;  %v2331_v8 = vld [vmem:[#allocation8 + $0x160] ss:$28 sps:$4 sm:$0xff]   ;;  %v694_v23 = vsub.s32 4, %v2592_v2 }
 0x1ec   :  { %v408_v17 = vpop.f32.mrf.mxu1  ;;  %v448_v18 = vpop.f32.mrf.mxu0  ;;  %2128 = vmatpush3.bf16.msra.mxu0 %v2331_v8 }
 0x1ed   :  { %v467_v19 = vpack.c.bf16 %v460_v15, %v460_v15  ;;  %v528_v26 = vsel %vm526_vm10, %v522_v24, 0  ;;  %2129 = vmatprep.subr.bf16.mxu0 %v2539_v0  ;;  %v2332_v15 = vld [vmem:[#allocation8 + $0x128] ss:$28 sps:$4 sm:$0xff]   ;;  %v2334_v17 = vld [vmem:[#allocation8 + $0xb8] ss:$28 sps:$4 sm:$0xff]   ;;  %v699_v24 = vsub.s32 5, %v2592_v2 }
 0x1ee   :  { %v409_v21 = vpop.f32.mrf.mxu1  ;;  %v2092_v22 = vpop.f32.mrf.mxu0  ;;  %v2336_v18 = vld [vmem:[#allocation8 + $0x48] ss:$28 sps:$4 sm:$0xff]  }
 0x1ef   :  { %2094 = vmatpush3.bf16.xpose.msra.mxu1 %v467_v19  ;;  %v2337_v19 = vld [vmem:[#allocation8 + $0x10] ss:$28 sps:$4 sm:$0xff]  }
 0x1f0   :  { %2099 = vmatprep.subr.bf16.mxu1 %v2539_v0  ;;  %2130 = vmatpush3.bf16.msra.mxu0 %v2332_v15  ;;  %v2350_v15 = vld [vmem:[#allocation8 + $0x310] ss:$28 sps:$4 sm:$0xff]  }
 0x1f1   :  { %2131 = vmatprep.subr.bf16.mxu0 %v2539_v0 }
 0x1f4   :  { %2132 = vmatpush3.bf16.msra.mxu0 %v2333_v16 }
 0x1f5   :  { %2133 = vmatprep.subr.bf16.mxu0 %v2539_v0 }
 0x1f6   :  { %2096 = vmatmul.mubr.bf16.vlgmr.msra.gmra.mxu1 %v466_v25  ;;  %v695_v25 = vrot.slane %v2663_v6, %v694_v23 }
 0x1f7   :  { %2100 = vmatpush3.bf16.msra.mxu1 %v528_v26  ;;  %2101 = vmatprep.mubr.msk.bf16.mxu1 %vm2540_vm0, %v2539_v0 }
 0x1f8   :  { %2105 = vmatprep.subr.bf16.mxu1 %v2539_v0  ;;  %2134 = vmatpush3.bf16.msra.mxu0 %v2334_v17 }
 0x1f9   :  { %2135 = vmatprep.subr.bf16.mxu0 %v2539_v0 }
 0x1fc   :  { %2136 = vmatpush3.bf16.msra.mxu0 %v2335_v41 }
 0x1fd   :  { %2137 = vmatprep.subr.bf16.mxu0 %v2539_v0 }
 0x200   :  { %2138 = vmatpush3.bf16.msra.mxu0 %v2336_v18 }
 0x201   :  { %2139 = vmatprep.subr.bf16.mxu0 %v2539_v0 }
 0x204   :  { %2140 = vmatpush3.bf16.msra.mxu0 %v2337_v19  ;;  %v2356_v19 = vld [vmem:[#allocation8 + $0x2dc] ss:$28 sps:$4 sm:$0xff]  }
 0x2b6   :  { %v502_v27 = vpop.f32.mrf.mxu1 }
 0x2b7   :  { %v508_v28 = vmul.f32 0.17677669, %v502_v27 }
 0x2b8   :  { %v2097_v29 = vpop.f32.mrf.mxu1 }
 0x2b9   :  { %v510_v30 = vsel %vm509_vm11, %v508_v28, -inf }
 0x2ba   :  { %511 = vmax.xlane.f32.xlu0 %v510_v30  ;;  %v505_v31 = vpop.f32.mrf.mxu1 }
 0x2bc   :  { %v2098_v32 = vpop.f32.mrf.mxu1 }
 0x2bd   :  { %v2338_v32 = vld [vmem:[#allocation8 + $0x19c] ss:$28 sps:$4 sm:$0xff]  }
 0x343   :  { %v512_v33 = vpop.xlane.xlu0 %511 }
 0x344   :  { %v513_v34 = vsub.f32 %v508_v28, %v512_v33  ;;  %v700_v28 = vrot.slane %v2663_v6, %v699_v24  ;;  %v2339_v33 = vld [vmem:[#allocation8 + $0x164] ss:$28 sps:$4 sm:$0xff]  }
 0x346   :  { %v514_v35 = vmul.f32 1.442695, %v513_v34  ;;  %v2340_v34 = vld [vmem:[#allocation8 + $0x12c] ss:$28 sps:$4 sm:$0xff]  }
 0x348   :  { %2410 = vpow2.f32 %v514_v35  ;;  %v2341_v35 = vld [vmem:[#allocation8 + $0xf4] ss:$28 sps:$4 sm:$0xff]  }
 0x355   :  { %v2411_v36 = vpop.eup %2410 }
 0x356   :  { %v516_v37 = vsel %vm509_vm11, %v2411_v36, 0.0 }
 0x357   :  { %517 = vadd.xlane.f32.xlu0 %v516_v37  ;;  %v2343_v37 = vld [vmem:[#allocation8 + $0x84] ss:$28 sps:$4 sm:$0xff]  }
 0x3e0   :  { %v518_v38 = vpop.xlane.xlu0 %517 }
 0x3e1   :  { %2412 = vrcp.f32 %v518_v38  ;;  %v2345_v38 = vld [vmem:[#allocation8 + $0x14] ss:$28 sps:$4 sm:$0xff]  }
 0x3ee   :  { %v2413_v39 = vpop.eup %2412 }
 0x3ef   :  { %v520_v40 = vmul.f32 %v2413_v39, %v2411_v36  ;;  %v2342_v36 = vld [vmem:[#allocation8 + $0xbc] ss:$28 sps:$4 sm:$0xff]   ;;  %v721_v39 = vsub.s32 6, %v2592_v2 }
 0x3f1   :  { %v521_v43 = vpack.c.bf16 %v520_v40, %v520_v40  ;;  %v722_v40 = vrot.slane %v2663_v6, %v721_v39 }
 0x3f3   :  { %2102 = vmatmul.mubr.msk.bf16.vlgmr.msra.gmra.mxu1 %vm509_vm11, %v521_v43 }
 0x3f4   :  { %2106 = vmatpush3.bf16.msra.mxu1 %v2322_v42  ;;  %2121 = vmatprep.mubr.msk.bf16.mxu1 %vm2540_vm0, %v2539_v0 }
 0x3f5   :  { %2107 = vmatprep.subr.bf16.mxu1 %v2539_v0 }
 0x3f8   :  { %2108 = vmatpush3.bf16.msra.mxu1 %v2323_v44 }
 0x3f9   :  { %2109 = vmatprep.subr.bf16.mxu1 %v2539_v0 }
 0x3fc   :  { %2110 = vmatpush3.bf16.msra.mxu1 %v2324_v45 }
 0x3fd   :  { %2111 = vmatprep.subr.bf16.mxu1 %v2539_v0 }
 0x400   :  { %2112 = vmatpush3.bf16.msra.mxu1 %v2325_v46 }
 0x401   :  { %2113 = vmatprep.subr.bf16.mxu1 %v2539_v0 }
 0x404   :  { %2114 = vmatpush3.bf16.msra.mxu1 %v2326_v47 }
 0x405   :  { %2115 = vmatprep.subr.bf16.mxu1 %v2539_v0 }
 0x408   :  { %2116 = vmatpush3.bf16.msra.mxu1 %v2327_v48 }
 0x409   :  { %2117 = vmatprep.subr.bf16.mxu1 %v2539_v0 }
 0x40c   :  { %2118 = vmatpush3.bf16.msra.mxu1 %v2328_v49 }
 0x40d   :  { %2119 = vmatprep.subr.bf16.mxu1 %v2539_v0 }
 0x410   :  { %2120 = vmatpush3.bf16.msra.mxu1 %v2329_v50 }
 0x411   :  { %2145 = vmatprep.subr.bf16.mxu1 %v2539_v0 }
 0x4b3   :  { %v564_v51 = vpop.f32.mrf.mxu1 }
 0x4b4   :  { %v570_v52 = vpack.c.bf16 %v564_v51, %v564_v51 }
 0x4b5   :  { %v2103_v53 = vpop.f32.mrf.mxu1 }
 0x4b6   :  { %2122 = vmatmul.mubr.bf16.vlgmr.msra.gmra.mxu1 %v570_v52 }
 0x4b7   :  { %v567_v54 = vpop.f32.mrf.mxu1  ;;  %2161 = vmatprep.mubr.msk.bf16.mxu1 %vm2540_vm0, %v2539_v0  ;;  %2146 = vmatpush3.bf16.msra.mxu1 %v2338_v32  ;;  %v2369_v32 = vld [vmem:[#allocation8 + $0x238] ss:$28 sps:$4 sm:$0xff]  }
 0x4b8   :  { %2147 = vmatprep.subr.bf16.mxu1 %v2539_v0 }
 0x4b9   :  { %v2104_v55 = vpop.f32.mrf.mxu1 }
 0x4bb   :  { %2148 = vmatpush3.bf16.msra.mxu1 %v2339_v33  ;;  %v2372_v33 = vld [vmem:[#allocation8 + $0x1fc] ss:$28 sps:$4 sm:$0xff]  }
 0x4bc   :  { %2149 = vmatprep.subr.bf16.mxu1 %v2539_v0 }
 0x4bf   :  { %2150 = vmatpush3.bf16.msra.mxu1 %v2340_v34  ;;  %v2370_v34 = vld [vmem:[#allocation8 + $0x1f8] ss:$28 sps:$4 sm:$0xff]  }
 0x4c0   :  { %2151 = vmatprep.subr.bf16.mxu1 %v2539_v0 }
 0x4c3   :  { %2152 = vmatpush3.bf16.msra.mxu1 %v2341_v35  ;;  %v2373_v35 = vld [vmem:[#allocation8 + $0x200] ss:$28 sps:$4 sm:$0xff]  }
 0x4c4   :  { %2153 = vmatprep.subr.bf16.mxu1 %v2539_v0 }
 0x4c7   :  { %2154 = vmatpush3.bf16.msra.mxu1 %v2342_v36  ;;  %v2376_v36 = vld [vmem:[#allocation8 + $0x1c4] ss:$28 sps:$4 sm:$0xff]  }
 0x4c8   :  { %2155 = vmatprep.subr.bf16.mxu1 %v2539_v0 }
 0x4cb   :  { %2156 = vmatpush3.bf16.msra.mxu1 %v2343_v37  ;;  %v2374_v37 = vld [vmem:[#allocation8 + $0x1c0] ss:$28 sps:$4 sm:$0xff]  }
 0x4cc   :  { %2157 = vmatprep.subr.bf16.mxu1 %v2539_v0 }
 0x576   :  { %v673_v58 = vpop.f32.mrf.mxu1 }
 0x577   :  { %v674_v59 = vadd.f32 %v673_v58, %v590_v57  ;;  %v839_v58 = vsub.s32 7, %v2592_v2 }
 0x578   :  { %v2123_v60 = vpop.f32.mrf.mxu1 }
 0x579   :  { %v679_v62 = vadd.f32 %v674_v59, %v2652_v1  ;;  %v840_v59 = vrot.slane %v2663_v6, %v839_v58 }
 0x57a   :  { %v676_v63 = vpop.f32.mrf.mxu1 }
 0x57b   :  { %680 = vadd.xlane.f32.xlu1 %v679_v62 }
 0x57c   :  { %v2124_v3 = vpop.f32.mrf.mxu1 }
 0x604   :  { %v681_v9 = vpop.xlane.xlu1 %680 }
 0x605   :  { %v682_v11 = vmul.f32 0.03125, %v681_v9  ;;  %v2346_v9 = vld [vmem:[#allocation8 + $0x348] ss:$28 sps:$4 sm:$0xff]  }
 0x607   :  { %v683_v13 = vsub.f32 %v679_v62, %v682_v11  ;;  %v2348_v11 = vld [vmem:[#allocation8 + $0x34c] ss:$28 sps:$4 sm:$0xff]  }
 0x608   :  { %1117 = vmatprep.subr.bf16.mxu0 %v2348_v11 }
 0x609   :  { %v684_v1 = vmul.f32 %v2705_v12, %v683_v13  ;;  %v2349_v13 = vld [vmem:[#allocation8 + $0x350] ss:$28 sps:$4 sm:$0xff]  }
 0x60b   :  { %v685_v14 = vmul.f32 %v684_v1, %v684_v1 }
 0x60d   :  { %686 = vadd.xlane.f32.xlu1 %v685_v14  ;;  %v2353_v14 = vld [vmem:[#allocation8 + $0x318] ss:$28 sps:$4 sm:$0xff]  }
 0x696   :  { %v687_v20 = vpop.xlane.xlu1 %686 }
 0x697   :  { %v688_v21 = vmul.f32 0.03125, %v687_v20  ;;  %v2354_v20 = vld [vmem:[#allocation8 + $0x2d8] ss:$28 sps:$4 sm:$0xff]  }
 0x699   :  { %v689_v22 = vadd.f32 1e-05, %v688_v21  ;;  %v2357_v21 = vld [vmem:[#allocation8 + $0x2e0] ss:$28 sps:$4 sm:$0xff]  }
 0x69b   :  { %2414 = vrsqrt.f32 %v689_v22  ;;  %v2358_v22 = vld [vmem:[#allocation8 + $0x2a0] ss:$28 sps:$4 sm:$0xff]  }
 0x6a8   :  { %v2415_v26 = vpop.eup %2414 }
 0x6a9   :  { %v691_v27 = vmul.f32 %v2415_v26, %v684_v1  ;;  %v2352_v1 = vld [vmem:[#allocation8 + $0x314] ss:$28 sps:$4 sm:$0xff]   ;;  %v2361_v26 = vld [vmem:[#allocation8 + $0x2a8] ss:$28 sps:$4 sm:$0xff]  }
 0x6ab   :  { %v696_v29 = vmul.f32 %v695_v25, %v691_v27  ;;  %v2360_v25 = vld [vmem:[#allocation8 + $0x2a4] ss:$28 sps:$4 sm:$0xff]   ;;  %v2364_v27 = vld [vmem:[#allocation8 + $0x26c] ss:$28 sps:$4 sm:$0xff]  }
 0x6ad   :  { %v701_v30 = vadd.f32 %v700_v28, %v696_v29  ;;  %v2362_v28 = vld [vmem:[#allocation8 + $0x268] ss:$28 sps:$4 sm:$0xff]   ;;  %v2365_v29 = vld [vmem:[#allocation8 + $0x270] ss:$28 sps:$4 sm:$0xff]  }
 0x6af   :  { %v702_v31 = vpack.c.bf16 %v701_v30, %v701_v30 }
 0x6b1   :  { %2142 = vmatmul.mubr.bf16.vlgmr.msra.gmra.mxu0 %v702_v31  ;;  %v2366_v31 = vld [vmem:[#allocation8 + $0x230] ss:$28 sps:$4 sm:$0xff]  }
 0x6b2   :  { %1149 = vmatprep.mubr.bf16.mxu0 %v2542_v61  ;;  %v2344_v61 = vld [vmem:[#allocation8 + $0x4c] ss:$28 sps:$4 sm:$0xff]   ;;  %1118 = vmatpush1.bf16.msra.mxu0 %v2346_v9 }
 0x6b3   :  { %2158 = vmatpush3.bf16.msra.mxu1 %v2344_v61  ;;  %1119 = vmatprep.subr.bf16.mxu0 %v2352_v1  ;;  %v2377_v61 = vld [vmem:[#allocation8 + $0x1c8] ss:$28 sps:$4 sm:$0xff]  }
 0x6b4   :  { %2159 = vmatprep.subr.bf16.mxu1 %v2539_v0 }
 0x6b6   :  { %1120 = vmatpush1.bf16.msra.mxu0 %v2350_v15 }
 0x6b7   :  { %2160 = vmatpush3.bf16.msra.mxu1 %v2345_v38  ;;  %1121 = vmatprep.subr.bf16.mxu0 %v2356_v19 }
 0x6b8   :  { %2165 = vmatprep.subr.bf16.mxu1 %v2539_v0 }
 0x6ba   :  { %1122 = vmatpush1.bf16.msra.mxu0 %v2354_v20 }
 0x6bb   :  { %1123 = vmatprep.subr.bf16.mxu0 %v2360_v25 }
 0x6be   :  { %1124 = vmatpush1.bf16.msra.mxu0 %v2358_v22 }
 0x6bf   :  { %1125 = vmatprep.subr.bf16.mxu0 %v2364_v27 }
 0x6c2   :  { %1126 = vmatpush1.bf16.msra.mxu0 %v2362_v28 }
 0x771   :  { %v805_v42 = vpop.f32.mrf.mxu0 }
 0x772   :  { %v806_v43 = vadd.f32 %v805_v42, %v722_v40 }
 0x773   :  { %v2143_v44 = vpop.f32.mrf.mxu0 }
 0x774   :  { %v812_v45 = vmul.f32 0.044715, %v806_v43  ;;  %v811_v53 = vmul.f32 0.5, %v806_v43 }
 0x775   :  { %v808_v46 = vpop.f32.mrf.mxu0 }
 0x776   :  { %v813_v47 = vmul.f32 %v812_v45, %v806_v43 }
 0x777   :  { %v2144_v48 = vpop.f32.mrf.mxu0 }
 0x778   :  { %v814_v49 = vmul.f32 %v813_v47, %v806_v43 }
 0x77a   :  { %v815_v50 = vadd.f32 %v814_v49, %v806_v43  ;;  %v208_v43 = vld [vmem:[#allocation9 + $0x8] sm:$0xff] }
 0x77b   :  { %v945_v44 = vrot.slane %v208_v43, %v2669_v10  ;;  %v950_v47 = vrot.slane %v208_v43, %v2661_v5 }
 0x77c   :  { %v816_v51 = vmul.f32 0.7978846, %v815_v50 }
 0x77e   :  { %2416 = vtanh.f32 %v816_v51  ;;  %v2760_v51 = vld [vmem:[#allocation9 + $0x10] sm:$0xff] }
 0x78b   :  { %v2417_v52 = vpop.eup %2416 }
 0x78c   :  { %v818_v54 = vadd.f32 1.0, %v2417_v52  ;;  %v1206_v52 = vrot.slane %v2760_v51, %v2661_v5 }
 0x78e   :  { %v819_v55 = vmul.f32 %v818_v54, %v811_v53 }
 0x790   :  { %v820_v57 = vpack.c.bf16 %v819_v55, %v819_v55  ;;  %v1211_v55 = vrot.slane %v2760_v51, %v463_v7 }
 0x792   :  { %2162 = vmatmul.mubr.bf16.vlgmr.msra.gmra.mxu1 %v820_v57 }
 0x793   :  { %2181 = vmatprep.mubr.msk.bf16.mxu1 %vm2540_vm0, %v2539_v0  ;;  %2166 = vmatpush3.bf16.msra.mxu1 %v2349_v13 }
 0x794   :  { %2167 = vmatprep.subr.bf16.mxu1 %v2539_v0 }
 0x797   :  { %2168 = vmatpush3.bf16.msra.mxu1 %v2353_v14 }
 0x798   :  { %2169 = vmatprep.subr.bf16.mxu1 %v2539_v0 }
 0x79b   :  { %2170 = vmatpush3.bf16.msra.mxu1 %v2357_v21 }
 0x79c   :  { %2171 = vmatprep.subr.bf16.mxu1 %v2539_v0 }
 0x79f   :  { %2172 = vmatpush3.bf16.msra.mxu1 %v2361_v26 }
 0x7a0   :  { %2173 = vmatprep.subr.bf16.mxu1 %v2539_v0 }
 0x7a3   :  { %2174 = vmatpush3.bf16.msra.mxu1 %v2365_v29  ;;  %v2378_v29 = vld [vmem:[#allocation8 + $0x354] ss:$28 sps:$4 sm:$0xff]  }
 0x7a4   :  { %2175 = vmatprep.subr.bf16.mxu1 %v2539_v0 }
 0x7a7   :  { %2176 = vmatpush3.bf16.msra.mxu1 %v2369_v32  ;;  %v2380_v32 = vld [vmem:[#allocation8 + $0x2e4] ss:$28 sps:$4 sm:$0xff]  }
 0x7a8   :  { %2177 = vmatprep.subr.bf16.mxu1 %v2539_v0 }
 0x7ab   :  { %2178 = vmatpush3.bf16.msra.mxu1 %v2373_v35  ;;  %v2383_v35 = vld [vmem:[#allocation8 + $0x23c] ss:$28 sps:$4 sm:$0xff]  }
 0x7ac   :  { %2179 = vmatprep.subr.bf16.mxu1 %v2539_v0 }
 0x7af   :  { %2180 = vmatpush3.bf16.msra.mxu1 %v2377_v61 }
 0x7b0   :  { %2217 = vmatprep.subr.bf16.mxu1 %v2539_v0 }
 0x852   :  { %v923_v60 = vpop.f32.mrf.mxu1 }
 0x853   :  { %v924_v62 = vadd.f32 %v923_v60, %v840_v59 }
 0x854   :  { %v2163_v63 = vpop.f32.mrf.mxu1 }
 0x855   :  { %v929_v3 = vadd.f32 %v924_v62, %v701_v30  ;;  %v2368_v30 = vld [vmem:[#allocation8 + $0x234] ss:$28 sps:$4 sm:$0xff]   ;;  %v1201_v62 = vrot.slane %v2760_v51, %v2669_v10 }
 0x856   :  { %v926_v4 = vpop.f32.mrf.mxu1  ;;  %1127 = vmatprep.subr.bf16.mxu0 %v2368_v30 }
 0x857   :  { %930 = vadd.xlane.f32.xlu0 %v929_v3  ;;  %1128 = vmatpush1.bf16.msra.mxu0 %v2366_v31  ;;  %v2379_v31 = vld [vmem:[#allocation8 + $0x31c] ss:$28 sps:$4 sm:$0xff]  }
 0x858   :  { %v2164_v8 = vpop.f32.mrf.mxu1  ;;  %1129 = vmatprep.subr.bf16.mxu0 %v2372_v33  ;;  %v2381_v33 = vld [vmem:[#allocation8 + $0x2ac] ss:$28 sps:$4 sm:$0xff]  }
 0x85b   :  { %1130 = vmatpush1.bf16.msra.mxu0 %v2370_v34  ;;  %v2382_v34 = vld [vmem:[#allocation8 + $0x274] ss:$28 sps:$4 sm:$0xff]  }
 0x85c   :  { %1131 = vmatprep.subr.bf16.mxu0 %v2376_v36  ;;  %v2384_v36 = vld [vmem:[#allocation8 + $0x204] ss:$28 sps:$4 sm:$0xff]  }
 0x85f   :  { %1132 = vmatpush1.bf16.msra.mxu0 %v2374_v37  ;;  %v2385_v37 = vld [vmem:[#allocation8 + $0x1cc] ss:$28 sps:$4 sm:$0xff]  }
 0x860   :  { %2185 = vmatprep.subr.bf16.mxu0 %v2539_v0 }
 0x8e0   :  { %v931_v6 = vpop.xlane.xlu0 %930 }
 0x8e1   :  { %v932_v16 = vmul.f32 0.03125, %v931_v6 }
 0x8e3   :  { %v933_v17 = vsub.f32 %v929_v3, %v932_v16 }
 0x8e5   :  { %v934_v41 = vmul.f32 %v2705_v12, %v933_v17 }
 0x8e7   :  { %v935_v18 = vmul.f32 %v934_v41, %v934_v41 }
 0x8e9   :  { %936 = vadd.xlane.f32.xlu1 %v935_v18 }
 0x972   :  { %v937_v38 = vpop.xlane.xlu1 %936 }
 0x973   :  { %v938_v40 = vmul.f32 0.03125, %v937_v38 }
 0x975   :  { %v939_v42 = vadd.f32 1e-05, %v938_v40 }
 0x977   :  { %2418 = vrsqrt.f32 %v939_v42 }
 0x984   :  { %v2419_v45 = vpop.eup %2418 }
 0x985   :  { %v941_v46 = vmul.f32 %v2419_v45, %v934_v41 }
 0x987   :  { %v946_v48 = vmul.f32 %v945_v44, %v941_v46  ;;  %v1335_v44 = vrot.slane %v2760_v51, %v589_v56 }
 0x989   :  { %v2752_v49 = vadd.f32 %v950_v47, %v946_v48 }
 0x98b   :  { %v955_v50 = vpack.c.bf16 %v2752_v49, %v2752_v49 }
 0x98d   :  { %1150 = vmatmul.mubr.bf16.vlgmr.msra.gmra.mxu0 %v955_v50  ;;  %2182 = vmatmul.mubr.bf16.vlgmr.msra.gmra.mxu1 %v955_v50 }
 0x98e   :  { %2187 = vmatprep.mubr.msk.bf16.mxu0 %vm2540_vm0, %v2539_v0  ;;  %2233 = vmatprep.mubr.msk.bf16.mxu1 %vm2540_vm0, %v2539_v0 }
 0xa4d   :  { %v1151_v53 = vpop.f32.mrf.mxu0  ;;  %v1192_v54 = vpop.f32.mrf.mxu1 }
 0xa4e   :  { %v1212_v8 = vadd.f32 %v1211_v55, %v1192_v54  ;;  %v1202_v13 = vadd.f32 %v1201_v62, %v1151_v53  ;;  %v2386_v53 = vld [vmem:[#allocation8 + $0x358] ss:$28 sps:$4 sm:$0xff]   ;;  %v2387_v54 = vld [vmem:[#allocation8 + $0x320] ss:$28 sps:$4 sm:$0xff]   ;;  %v2388_v62 = vld [vmem:[#allocation8 + $0x2e8] ss:$28 sps:$4 sm:$0xff]  }
 0xa4f   :  { %v1153_v57 = vpop.f32.mrf.mxu0  ;;  %v2183_v59 = vpop.f32.mrf.mxu1  ;;  %2218 = vmatpush3.bf16.msra.mxu1 %v2386_v53 }
 0xa50   :  { %v1207_v60 = vadd.f32 %v1206_v52, %v1153_v57  ;;  %v1268_v1 = vpack.c.bf16 %v1212_v8, %v1212_v8  ;;  %v1213_v14 = vpack.c.bf16 %v1202_v13, %v1202_v13  ;;  %2219 = vmatprep.subr.bf16.mxu1 %v2539_v0  ;;  %v2393_v8 = vld [vmem:[#allocation8 + $0x1d0] ss:$28 sps:$4 sm:$0xff]  }
 0xa51   :  { %v1155_v63 = vpop.f32.mrf.mxu0  ;;  %v1195_v3 = vpop.f32.mrf.mxu1 }
 0xa52   :  { %v1214_v4 = vpack.c.bf16 %v1207_v60, %v1207_v60  ;;  %v1273_v7 = vsel %vm526_vm10, %v1268_v1, 0  ;;  %v2390_v63 = vld [vmem:[#allocation8 + $0x278] ss:$28 sps:$4 sm:$0xff]   ;;  %v2391_v3 = vld [vmem:[#allocation8 + $0x240] ss:$28 sps:$4 sm:$0xff]   ;;  %v1440_v1 = vrot.slane %v2760_v51, %v694_v23 }
 0xa53   :  { %v1156_v9 = vpop.f32.mrf.mxu0  ;;  %v2184_v11 = vpop.f32.mrf.mxu1  ;;  %2220 = vmatpush3.bf16.msra.mxu1 %v2387_v54  ;;  %v2396_v23 = vld [vmem:[#allocation8 + $0x2ec] ss:$28 sps:$4 sm:$0xff]  }
 0xa54   :  { %2186 = vmatpush3.bf16.xpose.msra.mxu0 %v1214_v4  ;;  %2221 = vmatprep.subr.bf16.mxu1 %v2539_v0  ;;  %v2392_v4 = vld [vmem:[#allocation8 + $0x208] ss:$28 sps:$4 sm:$0xff]   ;;  %v2404_v54 = vld [vmem:[#allocation8 + $0x2f0] ss:$28 sps:$4 sm:$0xff]  }
 0xa55   :  { %2191 = vmatprep.subr.bf16.mxu0 %v2539_v0 }
 0xa57   :  { %2222 = vmatpush3.bf16.msra.mxu1 %v2388_v62 }
 0xa58   :  { %2223 = vmatprep.subr.bf16.mxu1 %v2539_v0 }
 0xa5b   :  { %2188 = vmatmul.mubr.bf16.vlgmr.msra.gmra.mxu0 %v1213_v14 }
 0xa5c   :  { %2192 = vmatpush3.bf16.msra.mxu0 %v1273_v7  ;;  %2193 = vmatprep.mubr.msk.bf16.mxu0 %vm2540_vm0, %v2539_v0 }
 0xa5d   :  { %2197 = vmatprep.subr.bf16.mxu0 %v2539_v0 }
 0xb1b   :  { %v1249_v15 = vpop.f32.mrf.mxu0 }
 0xb1c   :  { %v1255_v6 = vmul.f32 0.17677669, %v1249_v15  ;;  %v1445_v15 = vrot.slane %v2760_v51, %v699_v24  ;;  %v2397_v24 = vld [vmem:[#allocation8 + $0x2b4] ss:$28 sps:$4 sm:$0xff]  }
 0xb1d   :  { %v2189_v16 = vpop.f32.mrf.mxu0 }
 0xb1e   :  { %v1256_v17 = vsel %vm509_vm11, %v1255_v6, -inf }
 0xb1f   :  { %1257 = vmax.xlane.f32.xlu0 %v1256_v17  ;;  %v1252_v41 = vpop.f32.mrf.mxu0 }
 0xb20   :  { %v2394_v41 = vld [vmem:[#allocation8 + $0x35c] ss:$28 sps:$4 sm:$0xff]  }
 0xb21   :  { %v2190_v18 = vpop.f32.mrf.mxu0 }
 0xb22   :  { %v2395_v18 = vld [vmem:[#allocation8 + $0x324] ss:$28 sps:$4 sm:$0xff]  }
 0xba8   :  { %v1258_v19 = vpop.xlane.xlu0 %1257 }
 0xba9   :  { %v1259_v20 = vsub.f32 %v1255_v6, %v1258_v19  ;;  %v2398_v19 = vld [vmem:[#allocation8 + $0x27c] ss:$28 sps:$4 sm:$0xff]  }
 0xbab   :  { %v1260_v21 = vmul.f32 1.442695, %v1259_v20  ;;  %v2399_v20 = vld [vmem:[#allocation8 + $0x244] ss:$28 sps:$4 sm:$0xff]  }
 0xbad   :  { %2420 = vpow2.f32 %v1260_v21  ;;  %v2400_v21 = vld [vmem:[#allocation8 + $0x20c] ss:$28 sps:$4 sm:$0xff]  }
 0xbba   :  { %v2421_v22 = vpop.eup %2420 }
 0xbbb   :  { %v1262_v25 = vsel %vm509_vm11, %v2421_v22, 0.0 }
 0xbbc   :  { %1263 = vadd.xlane.f32.xlu1 %v1262_v25  ;;  %v1467_v25 = vrot.slane %v2760_v51, %v721_v39  ;;  %v1585_v39 = vrot.slane %v2760_v51, %v839_v58 }
 0xc45   :  { %v1264_v26 = vpop.xlane.xlu1 %1263 }
 0xc46   :  { %2422 = vrcp.f32 %v1264_v26 }
 0xc53   :  { %v2423_v27 = vpop.eup %2422 }
 0xc54   :  { %v1266_v28 = vmul.f32 %v2423_v27, %v2421_v22  ;;  %v2401_v22 = vld [vmem:[#allocation8 + $0x1d4] ss:$28 sps:$4 sm:$0xff]  }
 0xc56   :  { %v1267_v30 = vpack.c.bf16 %v1266_v28, %v1266_v28 }
 0xc58   :  { %2194 = vmatmul.mubr.msk.bf16.vlgmr.msra.gmra.mxu0 %vm509_vm11, %v1267_v30 }
 0xc59   :  { %2198 = vmatpush3.bf16.msra.mxu0 %v2378_v29  ;;  %2213 = vmatprep.mubr.msk.bf16.mxu0 %vm2540_vm0, %v2539_v0 }
 0xc5a   :  { %2199 = vmatprep.subr.bf16.mxu0 %v2539_v0 }
 0xc5d   :  { %2200 = vmatpush3.bf16.msra.mxu0 %v2379_v31 }
 0xc5e   :  { %2201 = vmatprep.subr.bf16.mxu0 %v2539_v0 }
 0xc61   :  { %2202 = vmatpush3.bf16.msra.mxu0 %v2380_v32 }
 0xc62   :  { %2203 = vmatprep.subr.bf16.mxu0 %v2539_v0 }
 0xc65   :  { %2204 = vmatpush3.bf16.msra.mxu0 %v2381_v33 }
 0xc66   :  { %2205 = vmatprep.subr.bf16.mxu0 %v2539_v0 }
 0xc69   :  { %2206 = vmatpush3.bf16.msra.mxu0 %v2382_v34 }
 0xc6a   :  { %2207 = vmatprep.subr.bf16.mxu0 %v2539_v0 }
 0xc6d   :  { %2208 = vmatpush3.bf16.msra.mxu0 %v2383_v35 }
 0xc6e   :  { %2209 = vmatprep.subr.bf16.mxu0 %v2539_v0 }
 0xc71   :  { %2210 = vmatpush3.bf16.msra.mxu0 %v2384_v36 }
 0xc72   :  { %2211 = vmatprep.subr.bf16.mxu0 %v2539_v0 }
 0xc75   :  { %2212 = vmatpush3.bf16.msra.mxu0 %v2385_v37 }
 0xc76   :  { %2237 = vmatprep.subr.bf16.mxu0 %v2539_v0 }
 0xd18   :  { %v1309_v61 = vpop.f32.mrf.mxu0 }
 0xd19   :  { %v1315_v38 = vpack.c.bf16 %v1309_v61, %v1309_v61 }
 0xd1a   :  { %v2195_v40 = vpop.f32.mrf.mxu0 }
 0xd1b   :  { %2214 = vmatmul.mubr.bf16.vlgmr.msra.gmra.mxu0 %v1315_v38 }
 0xd1c   :  { %v1312_v42 = vpop.f32.mrf.mxu0  ;;  %2253 = vmatprep.mubr.msk.bf16.mxu0 %vm2540_vm0, %v2539_v0  ;;  %2238 = vmatpush3.bf16.msra.mxu0 %v2394_v41 }
 0xd1d   :  { %2239 = vmatprep.subr.bf16.mxu0 %v2539_v0 }
 0xd1e   :  { %v2196_v43 = vpop.f32.mrf.mxu0 }
 0xd20   :  { %2240 = vmatpush3.bf16.msra.mxu0 %v2395_v18 }
 0xd21   :  { %2241 = vmatprep.subr.bf16.mxu0 %v2539_v0 }
 0xd24   :  { %2242 = vmatpush3.bf16.msra.mxu0 %v2396_v23 }
 0xd25   :  { %2243 = vmatprep.subr.bf16.mxu0 %v2539_v0 }
 0xd28   :  { %2244 = vmatpush3.bf16.msra.mxu0 %v2397_v24 }
 0xd29   :  { %2245 = vmatprep.subr.bf16.mxu0 %v2539_v0 }
 0xd2c   :  { %2246 = vmatpush3.bf16.msra.mxu0 %v2398_v19 }
 0xd2d   :  { %2247 = vmatprep.subr.bf16.mxu0 %v2539_v0 }
 0xd30   :  { %2248 = vmatpush3.bf16.msra.mxu0 %v2399_v20 }
 0xd31   :  { %2249 = vmatprep.subr.bf16.mxu0 %v2539_v0 }
 0xd34   :  { %2250 = vmatpush3.bf16.msra.mxu0 %v2400_v21 }
 0xd35   :  { %2251 = vmatprep.subr.bf16.mxu0 %v2539_v0 }
 0xd38   :  { %2252 = vmatpush3.bf16.msra.mxu0 %v2401_v22 }
 0xddb   :  { %v1418_v45 = vpop.f32.mrf.mxu0 }
 0xddc   :  { %v1419_v46 = vadd.f32 %v1418_v45, %v1335_v44 }
 0xddd   :  { %v2215_v47 = vpop.f32.mrf.mxu0 }
 0xdde   :  { %v1424_v48 = vadd.f32 %v1419_v46, %v2752_v49  ;;  %v2389_v49 = vld [vmem:[#allocation8 + $0x2b0] ss:$28 sps:$4 sm:$0xff]  }
 0xddf   :  { %v1421_v50 = vpop.f32.mrf.mxu0  ;;  %2224 = vmatpush3.bf16.msra.mxu1 %v2389_v49 }
 0xde0   :  { %1425 = vadd.xlane.f32.xlu0 %v1424_v48  ;;  %2225 = vmatprep.subr.bf16.mxu1 %v2539_v0  ;;  %v2403_v50 = vld [vmem:[#allocation8 + $0x328] ss:$28 sps:$4 sm:$0xff]  }
 0xde1   :  { %v2216_v52 = vpop.f32.mrf.mxu0 }
 0xde3   :  { %2226 = vmatpush3.bf16.msra.mxu1 %v2390_v63  ;;  %v954_v63 = vld [vmem:[#allocation9 + $0x18] sm:$0xff] }
 0xde4   :  { %2227 = vmatprep.subr.bf16.mxu1 %v2539_v0 }
 0xde7   :  { %2228 = vmatpush3.bf16.msra.mxu1 %v2391_v3  ;;  %v1690_v3 = vrot.slane %v954_v63, %v2669_v10 }
 0xde8   :  { %2229 = vmatprep.subr.bf16.mxu1 %v2539_v0 }
 0xdeb   :  { %2230 = vmatpush3.bf16.msra.mxu1 %v2392_v4 }
 0xdec   :  { %2231 = vmatprep.subr.bf16.mxu1 %v2539_v0 }
 0xdef   :  { %2232 = vmatpush3.bf16.msra.mxu1 %v2393_v8 }
 0xdf0   :  { %2257 = vmatprep.subr.bf16.mxu1 %v2539_v0 }
 0xe69   :  { %v1426_v55 = vpop.xlane.xlu0 %1425 }
 0xe6a   :  { %v1427_v57 = vmul.f32 0.03125, %v1426_v55  ;;  %v2405_v55 = vld [vmem:[#allocation8 + $0x2b8] ss:$28 sps:$4 sm:$0xff]  }
 0xe6c   :  { %v1428_v59 = vsub.f32 %v1424_v48, %v1427_v57  ;;  %v2402_v48 = vld [vmem:[#allocation8 + $0x360] ss:$28 sps:$4 sm:$0xff]  }
 0xe6d   :  { %v2406_v57 = vld [vmem:[#allocation8 + $0x280] ss:$28 sps:$4 sm:$0xff]  }
 0xe6e   :  { %v1429_v56 = vmul.f32 %v2705_v12, %v1428_v59  ;;  %v2407_v59 = vld [vmem:[#allocation8 + $0x248] ss:$28 sps:$4 sm:$0xff]  }
 0xe70   :  { %v1430_v60 = vmul.f32 %v1429_v56, %v1429_v56 }
 0xe72   :  { %1431 = vadd.xlane.f32.xlu1 %v1430_v60 }
 0xefb   :  { %v1432_v9 = vpop.xlane.xlu1 %1431 }
 0xefc   :  { %v1433_v11 = vmul.f32 0.03125, %v1432_v9  ;;  %v1695_v9 = vrot.slane %v954_v63, %v2661_v5 }
 0xefe   :  { %v1434_v13 = vadd.f32 1e-05, %v1433_v11 }
 0xf00   :  { %2424 = vrsqrt.f32 %v1434_v13 }
 0xf0d   :  { %v2425_v14 = vpop.eup %2424 }
 0xf0e   :  { %v1436_v7 = vmul.f32 %v2425_v14, %v1429_v56  ;;  %v2408_v56 = vld [vmem:[#allocation8 + $0x210] ss:$28 sps:$4 sm:$0xff]   ;;  %v1923_v14 = vld [vmem:[#allocation9 + $0x1a] ss:$0 sm:$0xff] }
 0xf10   :  { %v1441_v6 = vmul.f32 %v1440_v1, %v1436_v7 }
 0xf12   :  { %v1446_v16 = vadd.f32 %v1445_v15, %v1441_v6 }
 0xf14   :  { %v1447_v17 = vpack.c.bf16 %v1446_v16, %v1446_v16 }
 0xf16   :  { %2234 = vmatmul.mubr.bf16.vlgmr.msra.gmra.mxu1 %v1447_v17 }
 0xf17   :  { %2273 = vmatprep.mubr.msk.bf16.mxu1 %vm2540_vm0, %v2539_v0  ;;  %2258 = vmatpush3.bf16.msra.mxu1 %v2402_v48 }
 0xf18   :  { %2259 = vmatprep.subr.bf16.mxu1 %v2539_v0 }
 0xf1b   :  { %2260 = vmatpush3.bf16.msra.mxu1 %v2403_v50 }
 0xf1c   :  { %2261 = vmatprep.subr.bf16.mxu1 %v2539_v0 }
 0xf1f   :  { %2262 = vmatpush3.bf16.msra.mxu1 %v2404_v54 }
 0xf20   :  { %2263 = vmatprep.subr.bf16.mxu1 %v2539_v0 }
 0xf23   :  { %2264 = vmatpush3.bf16.msra.mxu1 %v2405_v55 }
 0xf24   :  { %2265 = vmatprep.subr.bf16.mxu1 %v2539_v0 }
 0xf27   :  { %2266 = vmatpush3.bf16.msra.mxu1 %v2406_v57 }
 0xf28   :  { %2267 = vmatprep.subr.bf16.mxu1 %v2539_v0 }
 0xf2b   :  { %2268 = vmatpush3.bf16.msra.mxu1 %v2407_v59 }
 0xf2c   :  { %2269 = vmatprep.subr.bf16.mxu1 %v2539_v0 }
 0xf2f   :  { %2270 = vmatpush3.bf16.msra.mxu1 %v2408_v56 }
 0xf30   :  { %2271 = vmatprep.subr.bf16.mxu1 %v2539_v0 }
 0xfd6   :  { %v1550_v26 = vpop.f32.mrf.mxu1 }
 0xfd7   :  { %v1551_v27 = vadd.f32 %v1550_v26, %v1467_v25 }
 0xfd8   :  { %v2235_v28 = vpop.f32.mrf.mxu1 }
 0xfd9   :  { %v1557_v29 = vmul.f32 0.044715, %v1551_v27  ;;  %v1556_v37 = vmul.f32 0.5, %v1551_v27 }
 0xfda   :  { %v1553_v30 = vpop.f32.mrf.mxu1 }
 0xfdb   :  { %v1558_v31 = vmul.f32 %v1557_v29, %v1551_v27 }
 0xfdc   :  { %v2236_v32 = vpop.f32.mrf.mxu1 }
 0xfdd   :  { %v1559_v33 = vmul.f32 %v1558_v31, %v1551_v27 }
 0xfdf   :  { %v1560_v34 = vadd.f32 %v1559_v33, %v1551_v27 }
 0xfe1   :  { %v1561_v35 = vmul.f32 0.7978846, %v1560_v34 }
 0xfe3   :  { %2426 = vtanh.f32 %v1561_v35 }
 0xff0   :  { %v2427_v36 = vpop.eup %2426 }
 0xff1   :  { %v1563_v61 = vadd.f32 1.0, %v2427_v36 }
 0xff3   :  { %v1564_v38 = vmul.f32 %v1563_v61, %v1556_v37 }
 0xff5   :  { %v1565_v40 = vpack.c.bf16 %v1564_v38, %v1564_v38 }
 0xff7   :  { %2254 = vmatmul.mubr.bf16.vlgmr.msra.gmra.mxu0 %v1565_v40 }
0x10b7   :  { %v1668_v42 = vpop.f32.mrf.mxu0 }
0x10b8   :  { %v1669_v43 = vadd.f32 %v1668_v42, %v1585_v39 }
0x10b9   :  { %v2255_v44 = vpop.f32.mrf.mxu0 }
0x10ba   :  { %v1674_v45 = vadd.f32 %v1669_v43, %v1446_v16 }
0x10bb   :  { %v1671_v46 = vpop.f32.mrf.mxu0 }
0x10bc   :  { %1675 = vadd.xlane.f32.xlu0 %v1674_v45 }
0x10bd   :  { %v2256_v47 = vpop.f32.mrf.mxu0 }
0x1145   :  { %v1676_v52 = vpop.xlane.xlu0 %1675 }
0x1146   :  { %v1677_v53 = vmul.f32 0.03125, %v1676_v52 }
0x1148   :  { %v1678_v2 = vsub.f32 %v1674_v45, %v1677_v53 }
0x114a   :  { %v1679_v58 = vmul.f32 %v2705_v12, %v1678_v2  ;;  %v2409_v12 = vld [vmem:[#allocation8 + $0x1d8] ss:$28 sps:$4 sm:$0xff]  }
0x114b   :  { %2272 = vmatpush3.bf16.msra.mxu1 %v2409_v12 }
0x114c   :  { %v1680_v51 = vmul.f32 %v1679_v58, %v1679_v58 }
0x114e   :  { %1681 = vadd.xlane.f32.xlu1 %v1680_v51 }
0x11d7   :  { %v1682_v60 = vpop.xlane.xlu1 %1681 }
0x11d8   :  { %v1683_v62 = vmul.f32 0.03125, %v1682_v60 }
0x11da   :  { %v1684_v49 = vadd.f32 1e-05, %v1683_v62 }
0x11dc   :  { %2428 = vrsqrt.f32 %v1684_v49 }
0x11e9   :  { %v2429_v4 = vpop.eup %2428 }
0x11ea   :  { %v1686_v8 = vmul.f32 %v2429_v4, %v1679_v58 }
0x11ec   :  { %v1691_v11 = vmul.f32 %v1690_v3, %v1686_v8 }
0x11ee   :  { %v1696_v13 = vadd.f32 %v1695_v9, %v1691_v11 }
0x11f0   :  { %v1697_v1 = vpack.c.bf16 %v1696_v13, %v1696_v13 }
0x11f2   :  { %2274 = vmatmul.mubr.bf16.vlgmr.msra.gmra.mxu1 %v1697_v1 }
0x12b2   :  { %v1801_v7 = vpop.f32.mrf.mxu1 }
0x12b3   :  { %v1802_v15 = vadd.f32 %v1923_v14, %v1801_v7 }
0x12b4   :  { %v2275_v0 = vpop.f32.mrf.mxu1 }
0x12b5   :  { %1807 = vst [vmem:[%s2841_s5] sm:$0xff] %v1802_v15 }
0x12b6   :  { %v1804_v6 = vpop.f32.mrf.mxu1 }
0x12b8   :  { %v2276_v16 = vpop.f32.mrf.mxu1 }
0x12b9   :  { %1812 = vsyncpa [#allocation5], 1 }
0x12ba   :  { %1813 = vsyncpa [#allocation7], 1 }
0x12bb   :  { %1814 = vsyncpa [#allocation10], 1 }

</bundles_post_ra>
